<compile_context>
chip_gen: v5e
topology: v5e:2x2
jax: 0.10.0
libtpu: 0.0.40
codegen_flags: <defaults>
</compile_context>

<pallas_src>
import functools
import math

import jax
import jax.numpy as jnp
from jax.experimental import pallas as pl
from jax.experimental.pallas import tpu as pltpu

TARGET_LANES = 8192                 # lanes (rows * padded W) per grid step
VMEM_LIMIT_BYTES = 32 * 1024 * 1024  # safe on v5e/v6e (128 MiB) and v7x (64 MiB)


# ------------------------------- fused kernel --------------------------------

def _make_encoder_kernel(stem_cfg, n_res, final_relu):
    """stem_cfg: list of (kw, relu_after). ResBlock = ReLU,conv3,ReLU,conv1 + skip."""

    def kernel(x_ref, mask_ref, *refs):
        o_ref = refs[-1]
        prm = refs[:-1]
        mask = mask_ref[...]                 # (1, Mt) f32, 0 at per-row W-pad lanes

        def conv(h, w_ref, kw, relu):
            # h: (Cin, Mt) f32 activation whose pad lanes are exactly zero.
            # w_ref: (Cout, kw*Cin + 1) bf16; last column is the bias, contracted
            # against the mask row appended to the RHS (bias only at valid lanes).
            cin, mt = h.shape
            if kw == 1:
                rhs = jnp.concatenate([h, mask], axis=0)
            else:
                # In-register im2col: three lane-shifted copies stacked along K so
                # the whole 3-tap conv is ONE MXU dot (accumulation inside the MXU).
                z = jnp.zeros((cin, 1), h.dtype)
                xp = jnp.concatenate([z, h, z], axis=1)            # (Cin, Mt+2)
                rhs = jnp.concatenate(
                    [xp[:, 0:mt], xp[:, 1:1 + mt], xp[:, 2:2 + mt], mask], axis=0)
            y = jnp.dot(w_ref[...], rhs.astype(jnp.bfloat16),
                        preferred_element_type=jnp.float32)
            if kw != 1:
                y = y * mask     # 3-tap conv leaks into pad lanes; re-zero them
            if relu:
                y = jnp.maximum(y, 0.0)
            return y

        a = x_ref[...].astype(jnp.float32)
        i = 0
        for kw, relu in stem_cfg:
            a = conv(a, prm[i], kw, relu)
            i += 1
        for _ in range(n_res):
            h = conv(jnp.maximum(a, 0.0), prm[i], 3, True)
            h = conv(h, prm[i + 1], 1, False)          # 1x1 conv keeps pads at 0
            a = a + h
            i += 2
        if final_relu:
            a = jnp.maximum(a, 0.0)
        o_ref[...] = a

    return kernel


# --------------------------- layout / weight prep ----------------------------

def _to_lane_layout(x_rwc):
    """(rows, W, C) -> (C, rows*(W+2)), each row zero-padded by 1 on both W sides."""
    r, w, c = x_rwc.shape
    xp = jnp.pad(x_rwc, ((0, 0), (1, 1), (0, 0)))
    return jnp.transpose(xp, (2, 0, 1)).reshape(c, r * (w + 2))


def _from_lane_layout(y_cm, rows, wp):
    """(C, rows*wp) -> (rows, wp-2, C), dropping the per-row padding lanes."""
    c = y_cm.shape[0]
    y = y_cm.reshape(c, rows, wp)[:, :, 1:wp - 1]
    return jnp.transpose(y, (1, 2, 0))


def _conv_weight(w_oihw):
    """(Cout, Cin, 1, kw) -> (Cout, kw*Cin), tap-major blocks of Cin columns."""
    cout, cin, kh, kw = w_oihw.shape
    assert kh == 1
    return jnp.transpose(w_oihw[:, :, 0, :], (0, 2, 1)).reshape(cout, kw * cin)


def _packed_conv_weight(w_oihw):
    """(1,4)/stride-2/pad-1 conv == stride-1 (1,3)/pad-1 conv on W-pair-packed input.

    Packed channel order is [even element (Cin), odd element (Cin)].
    """
    cout, cin, kh, kw = w_oihw.shape
    assert kh == 1 and kw == 4
    w = w_oihw[:, :, 0, :]
    z = jnp.zeros((cout, cin), w.dtype)
    tap0 = jnp.concatenate([z, w[:, :, 0]], axis=1)            # left pair (odd elem)
    tap1 = jnp.concatenate([w[:, :, 1], w[:, :, 2]], axis=1)   # center pair
    tap2 = jnp.concatenate([w[:, :, 3], z], axis=1)            # right pair (even elem)
    return jnp.concatenate([tap0, tap1, tap2], axis=1)         # (Cout, 3*2*Cin)


def _quad_first_conv_weight(w_oihw):
    """First (1,4)/stride-2/pad-1 conv of the stride-4 stem, expressed as a stride-1
    (1,3) conv over W-QUAD-packed input, emitting outputs already PAIR-packed as
    [even outputs (C1) ; odd outputs (C1)] so the second strided conv fuses directly.
    """
    c1, cin, kh, kw = w_oihw.shape
    assert kh == 1 and kw == 4
    w = w_oihw[:, :, 0, :]                                     # (C1, Cin, 4)
    z = jnp.zeros((c1, cin), w.dtype)
    # quad channel order: [x[4q], x[4q+1], x[4q+2], x[4q+3]], each Cin wide
    ev_tap0 = jnp.concatenate([z, z, z, w[:, :, 0]], axis=1)
    ev_tap1 = jnp.concatenate([w[:, :, 1], w[:, :, 2], w[:, :, 3], z], axis=1)
    ev_tap2 = jnp.concatenate([z, z, z, z], axis=1)
    od_tap0 = jnp.concatenate([z, z, z, z], axis=1)
    od_tap1 = jnp.concatenate([z, w[:, :, 0], w[:, :, 1], w[:, :, 2]], axis=1)
    od_tap2 = jnp.concatenate([w[:, :, 3], z, z, z], axis=1)
    even = jnp.concatenate([ev_tap0, ev_tap1, ev_tap2], axis=1)
    odd = jnp.concatenate([od_tap0, od_tap1, od_tap2], axis=1)
    return jnp.concatenate([even, odd], axis=0)                # (2*C1, 3*4*Cin)


def _aug(wmat, bias):
    """Fold the bias into the weight as an extra column (contracts with the mask row)."""
    return jnp.concatenate([wmat, bias.reshape(-1, 1)], axis=1).astype(jnp.bfloat16)


def _choose_tiling(rows, wp):
    """Rows per tile and tile count: lanes-per-tile a multiple of 128 (lane-dense
    stores), ~TARGET_LANES per step, even tile count when multi-tile (v7x megacore)."""
    unit = 128 // math.gcd(wp, 128)                 # rows per 128-lane-aligned chunk
    chunks = -(-rows // unit)
    max_chunks = max(1, (TARGET_LANES // wp) // unit)
    if chunks <= max_chunks:
        return chunks * unit, 1
    n_tiles = -(-chunks // max_chunks)
    if n_tiles % 2:
        n_tiles += 1
    k = -(-chunks // n_tiles)
    return k * unit, n_tiles


# ------------------------------ fused stage call -----------------------------

def _run_stage(x_rwc, stem, res, final_relu):
    """Run one fully fused encoder as a single pallas_call.

    x_rwc: (rows, W', Cin) f32 (already W-packed).  stem: list of (w_aug, kw, relu).
    res:   list of (w3_aug, w1_aug).  Returns (rows, W', Cout) f32.
    """
    rows, wdim, cin = x_rwc.shape
    wp = wdim + 2
    cout = stem[-1][0].shape[0]

    x_cm = _to_lane_layout(x_rwc).astype(jnp.bfloat16)        # (Cin, rows*wp)
    rpt, n_tiles = _choose_tiling(rows, wp)
    rows_pad = rpt * n_tiles
    if rows_pad != rows:
        x_cm = jnp.pad(x_cm, ((0, 0), (0, (rows_pad - rows) * wp)))
    mt = rpt * wp

    # Per-tile mask: 0 at the two per-row W-padding lanes, 1 elsewhere.
    lane_w = jnp.arange(mt, dtype=jnp.int32) % wp
    mask = ((lane_w != 0) & (lane_w != wp - 1)).astype(jnp.float32).reshape(1, mt)

    flat_w = [w for (w, _, _) in stem]
    stem_cfg = [(kw, relu) for (_, kw, relu) in stem]
    for wa, wb in res:
        flat_w += [wa, wb]

    in_specs = [pl.BlockSpec((cin, mt), lambda i: (0, i)),
                pl.BlockSpec((1, mt), lambda i: (0, 0))]
    for p in flat_w:
        in_specs.append(pl.BlockSpec(p.shape, lambda i: (0, 0)))

    m_total = rows_pad * wp
    flops = sum(2 * w.shape[0] * w.shape[1] * m_total for w in flat_w)
    bytes_accessed = (x_cm.size * 2 + cout * m_total * 4
                      + n_tiles * (mask.size * 4 + sum(w.size * 2 for w in flat_w)))

    kern = _make_encoder_kernel(stem_cfg, len(res), final_relu)
    y = pl.pallas_call(
        kern,
        out_shape=jax.ShapeDtypeStruct((cout, m_total), jnp.float32),
        grid_spec=pltpu.PrefetchScalarGridSpec(
            num_scalar_prefetch=0,
            grid=(n_tiles,),
            in_specs=in_specs,
            out_specs=pl.BlockSpec((cout, mt), lambda i: (0, i))),
        compiler_params=pltpu.CompilerParams(
            dimension_semantics=("parallel",),
            vmem_limit_bytes=VMEM_LIMIT_BYTES),
        cost_estimate=pl.CostEstimate(flops=int(flops), transcendentals=0,
                                      bytes_accessed=int(bytes_accessed)),
    )(x_cm, mask, *flat_w)

    if rows_pad != rows:
        y = y[:, :rows * wp]
    return _from_lane_layout(y, rows, wp)


# -------------------------------- encoder model ------------------------------

def _init_conv(key, cout, cin, kw, scale=0.1):
    k1, k2 = jax.random.split(key)
    w = jax.random.normal(k1, (cout, cin, 1, kw), jnp.float32) * scale
    b = jax.random.normal(k2, (cout,), jnp.float32) * scale
    return w, b


def init_encoder_params(key, in_channel, channel, n_res_block, n_res_channel, stride):
    n_stem = 3 if stride == 4 else 2
    keys = jax.random.split(key, n_stem + 2 * n_res_block)
    p = {}
    if stride == 4:
        p["stem"] = [
            _init_conv(keys[0], channel // 2, in_channel, 4),
            _init_conv(keys[1], channel, channel // 2, 4),
            _init_conv(keys[2], channel, channel, 3),
        ]
    elif stride == 2:
        p["stem"] = [
            _init_conv(keys[0], channel // 2, in_channel, 4),
            _init_conv(keys[1], channel, channel // 2, 3),
        ]
    else:
        raise ValueError("stride must be 2 or 4")
    p["res"] = []
    for i in range(n_res_block):
        p["res"].append((
            _init_conv(keys[n_stem + 2 * i], n_res_channel, channel, 3),
            _init_conv(keys[n_stem + 2 * i + 1], channel, n_res_channel, 1),
        ))
    return p


@functools.partial(jax.jit, static_argnames=("stride",))
def encoder_forward(x_nchw, params, *, stride):
    """Forward of VQVAE_C.Encoder (stride 2 or 4), NCHW in / NCHW out."""
    n, cin, h, w = x_nchw.shape

    # All convs have kernel height 1 / zero H padding => H is only subsampled.
    if stride == 2:
        assert w % 2 == 0
        xs = x_nchw[:, :, ::2, :]
    elif stride == 4:
        assert w % 4 == 0
        xs = x_nchw[:, :, ::4, :]
    else:
        raise ValueError("stride must be 2 or 4")
    h_out = xs.shape[2]
    rows = n * h_out
    x_rwc = jnp.transpose(xs, (0, 2, 3, 1)).reshape(rows, w, cin)

    res = []
    for (wa, ba), (wb, bb) in params["res"]:
        res.append((_aug(_conv_weight(wa), ba), _aug(_conv_weight(wb), bb)))

    if stride == 2:
        (w1, b1), (w2, b2) = params["stem"]
        stem = [(_aug(_packed_conv_weight(w1), b1), 3, True),
                (_aug(_conv_weight(w2), b2), 3, False)]
        x_packed = x_rwc.reshape(rows, w // 2, 2 * cin)     # W pair space-to-depth
        ch = w2.shape[0]
    else:
        (w1, b1), (w2, b2), (w3, b3) = params["stem"]
        stem = [(_aug(_quad_first_conv_weight(w1), jnp.concatenate([b1, b1])), 3, True),
                (_aug(_packed_conv_weight(w2), b2), 3, True),
                (_aug(_conv_weight(w3), b3), 3, False)]
        x_packed = x_rwc.reshape(rows, w // 4, 4 * cin)     # W quad space-to-depth
        ch = w3.shape[0]

    out = _run_stage(x_packed, stem, res, final_relu=True)  # (rows, W', ch)
    w_out = out.shape[1]
    return jnp.transpose(out.reshape(n, h_out, w_out, ch), (0, 3, 1, 2))


# Pure-JAX reference (lax.conv at HIGHEST precision) to validate the Pallas path.
def encoder_ref(x_nchw, params, stride):
    def conv(x, w, b, s, p):
        y = jax.lax.conv_general_dilated(
            x, w, (s, s), ((0, 0), (p, p)),
            dimension_numbers=("NCHW", "OIHW", "NCHW"),
            precision=jax.lax.Precision.HIGHEST)
        return y + b.reshape(1, -1, 1, 1)

    x = x_nchw
    if stride == 4:
        (w1, b1), (w2, b2), (w3, b3) = params["stem"]
        x = jax.nn.relu(conv(x, w1, b1, 2, 1))
        x = jax.nn.relu(conv(x, w2, b2, 2, 1))
        x = conv(x, w3, b3, 1, 1)
    else:
        (w1, b1), (w2, b2) = params["stem"]
        x = jax.nn.relu(conv(x, w1, b1, 2, 1))
        x = conv(x, w2, b2, 1, 1)
    for (wr1, br1), (wr2, br2) in params["res"]:
        h = jax.nn.relu(conv(jax.nn.relu(x), wr1, br1, 1, 1))
        x = conv(h, wr2, br2, 1, 0) + x
    return jax.nn.relu(x)


if __name__ == "__main__":
    in_channel, channel, n_res_block, n_res_channel = 4, 32, 2, 16

    key = jax.random.PRNGKey(0)
    kx, kp2, kp4 = jax.random.split(key, 3)
    x = jax.random.normal(kx, (2, in_channel, 16, 16), jnp.float32)

    expected = {2: (2, channel, 8, 8), 4: (2, channel, 4, 4)}
    for stride, kp in ((2, kp2), (4, kp4)):
        params = init_encoder_params(kp, in_channel, channel, n_res_block,
                                     n_res_channel, stride)
        out = jax.block_until_ready(encoder_forward(x, params, stride=stride))
        ref = jax.block_until_ready(encoder_ref(x, params, stride))
        assert out.shape == ref.shape == expected[stride], (out.shape, ref.shape)
        err = float(jnp.max(jnp.abs(out - ref)))
        # Tolerance sized for bf16 matmul inputs (f32 accumulation) inside the kernel.
        assert jnp.allclose(out, ref, atol=3e-2, rtol=3e-2), err

    print("KERNEL_OK")
</pallas_src>

<mosaic_0001>
module attributes {stable_mosaic.version = 11 : i64} {
  func.func @kernel(%arg0: i32, %arg1: memref<8x640xbf16, #tpu.memory_space<vmem>>, %arg2: memref<1x640xf32, #tpu.memory_space<vmem>>, %arg3: memref<16x25xbf16, #tpu.memory_space<vmem>>, %arg4: memref<32x49xbf16, #tpu.memory_space<vmem>>, %arg5: memref<16x97xbf16, #tpu.memory_space<vmem>>, %arg6: memref<32x17xbf16, #tpu.memory_space<vmem>>, %arg7: memref<16x97xbf16, #tpu.memory_space<vmem>>, %arg8: memref<32x17xbf16, #tpu.memory_space<vmem>>, %arg9: memref<32x640xf32, #tpu.memory_space<vmem>>) attributes {dimension_semantics = [#tpu.dimension_semantics<parallel>], iteration_bounds = array<i64: 1>, scalar_prefetch = 0 : i64, scratch_operands = 0 : i64, tpu.core_type = #tpu.core_type<tc>, window_params = [{transform_indices = @transform_0, window_bounds = array<i64: 8, 640>}, {pipeline_mode = #tpu.pipeline_mode<synchronous>, transform_indices = @transform_1, window_bounds = array<i64: 1, 640>}, {pipeline_mode = #tpu.pipeline_mode<synchronous>, transform_indices = @transform_2, window_bounds = array<i64: 16, 25>}, {pipeline_mode = #tpu.pipeline_mode<synchronous>, transform_indices = @transform_3, window_bounds = array<i64: 32, 49>}, {pipeline_mode = #tpu.pipeline_mode<synchronous>, transform_indices = @transform_4, window_bounds = array<i64: 16, 97>}, {pipeline_mode = #tpu.pipeline_mode<synchronous>, transform_indices = @transform_5, window_bounds = array<i64: 32, 17>}, {pipeline_mode = #tpu.pipeline_mode<synchronous>, transform_indices = @transform_6, window_bounds = array<i64: 16, 97>}, {pipeline_mode = #tpu.pipeline_mode<synchronous>, transform_indices = @transform_7, window_bounds = array<i64: 32, 17>}, {transform_indices = @transform_8, window_bounds = array<i64: 32, 640>}]} {
    %c0 = arith.constant 0 : index
    %c0_0 = arith.constant 0 : index
    %0 = vector.load %arg2[%c0, %c0_0] : memref<1x640xf32, #tpu.memory_space<vmem>>, vector<1x640xf32>
    %c0_1 = arith.constant 0 : index
    %c0_2 = arith.constant 0 : index
    %1 = vector.load %arg1[%c0_1, %c0_2] : memref<8x640xbf16, #tpu.memory_space<vmem>>, vector<8x640xbf16>
    %2 = arith.extf %1 : vector<8x640xbf16> to vector<8x640xf32>
    %cst = arith.constant 0.000000e+00 : f32
    %3 = vector.broadcast %cst : f32 to vector<8x1xf32>
    %4 = tpu.concatenate %3, %2, %3 in 1 : vector<8x1xf32>, vector<8x640xf32>, vector<8x1xf32> -> vector<8x642xf32>
    %5 = vector.extract_strided_slice %4 {offsets = [0, 0], sizes = [8, 640], strides = [1, 1]} : vector<8x642xf32> to vector<8x640xf32>
    %6 = vector.extract_strided_slice %4 {offsets = [0, 1], sizes = [8, 640], strides = [1, 1]} : vector<8x642xf32> to vector<8x640xf32>
    %7 = vector.extract_strided_slice %4 {offsets = [0, 2], sizes = [8, 640], strides = [1, 1]} : vector<8x642xf32> to vector<8x640xf32>
    %8 = tpu.concatenate %5, %6, %7, %0 in 0 : vector<8x640xf32>, vector<8x640xf32>, vector<8x640xf32>, vector<1x640xf32> -> vector<25x640xf32>
    %c0_3 = arith.constant 0 : index
    %c0_4 = arith.constant 0 : index
    %9 = vector.load %arg3[%c0_3, %c0_4] : memref<16x25xbf16, #tpu.memory_space<vmem>>, vector<16x25xbf16>
    %10 = arith.truncf %8 : vector<25x640xf32> to vector<25x640xbf16>
    %cst_5 = arith.constant dense<0.000000e+00> : vector<16x640xf32>
    %11 = tpu.matmul %9, %10, %cst_5 {dimension_numbers = #tpu.dot_dimension_numbers<[1], [0], [0], [1], [0, 0, 1, 1], [], []>} : vector<16x25xbf16>, vector<25x640xbf16>, vector<16x640xf32> -> vector<16x640xf32>
    %12 = vector.broadcast %0 : vector<1x640xf32> to vector<16x640xf32>
    %13 = arith.mulf %11, %12 : vector<16x640xf32>
    %cst_6 = arith.constant 0.000000e+00 : f32
    %14 = vector.broadcast %cst_6 : f32 to vector<16x640xf32>
    %15 = arith.maximumf %13, %14 : vector<16x640xf32>
    %cst_7 = arith.constant 0.000000e+00 : f32
    %16 = vector.broadcast %cst_7 : f32 to vector<16x1xf32>
    %17 = tpu.concatenate %16, %15, %16 in 1 : vector<16x1xf32>, vector<16x640xf32>, vector<16x1xf32> -> vector<16x642xf32>
    %18 = vector.extract_strided_slice %17 {offsets = [0, 0], sizes = [16, 640], strides = [1, 1]} : vector<16x642xf32> to vector<16x640xf32>
    %19 = vector.extract_strided_slice %17 {offsets = [0, 1], sizes = [16, 640], strides = [1, 1]} : vector<16x642xf32> to vector<16x640xf32>
    %20 = vector.extract_strided_slice %17 {offsets = [0, 2], sizes = [16, 640], strides = [1, 1]} : vector<16x642xf32> to vector<16x640xf32>
    %21 = tpu.concatenate %18, %19, %20, %0 in 0 : vector<16x640xf32>, vector<16x640xf32>, vector<16x640xf32>, vector<1x640xf32> -> vector<49x640xf32>
    %c0_8 = arith.constant 0 : index
    %c0_9 = arith.constant 0 : index
    %22 = vector.load %arg4[%c0_8, %c0_9] : memref<32x49xbf16, #tpu.memory_space<vmem>>, vector<32x49xbf16>
    %23 = arith.truncf %21 : vector<49x640xf32> to vector<49x640xbf16>
    %cst_10 = arith.constant dense<0.000000e+00> : vector<32x640xf32>
    %24 = tpu.matmul %22, %23, %cst_10 {dimension_numbers = #tpu.dot_dimension_numbers<[1], [0], [0], [1], [0, 0, 1, 1], [], []>} : vector<32x49xbf16>, vector<49x640xbf16>, vector<32x640xf32> -> vector<32x640xf32>
    %25 = vector.broadcast %0 : vector<1x640xf32> to vector<32x640xf32>
    %26 = arith.mulf %24, %25 : vector<32x640xf32>
    %cst_11 = arith.constant 0.000000e+00 : f32
    %27 = vector.broadcast %cst_11 : f32 to vector<32x640xf32>
    %28 = arith.maximumf %26, %27 : vector<32x640xf32>
    %cst_12 = arith.constant 0.000000e+00 : f32
    %29 = vector.broadcast %cst_12 : f32 to vector<32x1xf32>
    %30 = tpu.concatenate %29, %28, %29 in 1 : vector<32x1xf32>, vector<32x640xf32>, vector<32x1xf32> -> vector<32x642xf32>
    %31 = vector.extract_strided_slice %30 {offsets = [0, 0], sizes = [32, 640], strides = [1, 1]} : vector<32x642xf32> to vector<32x640xf32>
    %32 = vector.extract_strided_slice %30 {offsets = [0, 1], sizes = [32, 640], strides = [1, 1]} : vector<32x642xf32> to vector<32x640xf32>
    %33 = vector.extract_strided_slice %30 {offsets = [0, 2], sizes = [32, 640], strides = [1, 1]} : vector<32x642xf32> to vector<32x640xf32>
    %34 = tpu.concatenate %31, %32, %33, %0 in 0 : vector<32x640xf32>, vector<32x640xf32>, vector<32x640xf32>, vector<1x640xf32> -> vector<97x640xf32>
    %c0_13 = arith.constant 0 : index
    %c0_14 = arith.constant 0 : index
    %35 = vector.load %arg5[%c0_13, %c0_14] : memref<16x97xbf16, #tpu.memory_space<vmem>>, vector<16x97xbf16>
    %36 = arith.truncf %34 : vector<97x640xf32> to vector<97x640xbf16>
    %cst_15 = arith.constant dense<0.000000e+00> : vector<16x640xf32>
    %37 = tpu.matmul %35, %36, %cst_15 {dimension_numbers = #tpu.dot_dimension_numbers<[1], [0], [0], [1], [0, 0, 1, 1], [], []>} : vector<16x97xbf16>, vector<97x640xbf16>, vector<16x640xf32> -> vector<16x640xf32>
    %38 = vector.broadcast %0 : vector<1x640xf32> to vector<16x640xf32>
    %39 = arith.mulf %37, %38 : vector<16x640xf32>
    %cst_16 = arith.constant 0.000000e+00 : f32
    %40 = vector.broadcast %cst_16 : f32 to vector<16x640xf32>
    %41 = arith.maximumf %39, %40 : vector<16x640xf32>
    %42 = tpu.concatenate %41, %0 in 0 : vector<16x640xf32>, vector<1x640xf32> -> vector<17x640xf32>
    %c0_17 = arith.constant 0 : index
    %c0_18 = arith.constant 0 : index
    %43 = vector.load %arg6[%c0_17, %c0_18] : memref<32x17xbf16, #tpu.memory_space<vmem>>, vector<32x17xbf16>
    %44 = arith.truncf %42 : vector<17x640xf32> to vector<17x640xbf16>
    %cst_19 = arith.constant dense<0.000000e+00> : vector<32x640xf32>
    %45 = tpu.matmul %43, %44, %cst_19 {dimension_numbers = #tpu.dot_dimension_numbers<[1], [0], [0], [1], [0, 0, 1, 1], [], []>} : vector<32x17xbf16>, vector<17x640xbf16>, vector<32x640xf32> -> vector<32x640xf32>
    %46 = arith.addf %26, %45 : vector<32x640xf32>
    %cst_20 = arith.constant 0.000000e+00 : f32
    %47 = vector.broadcast %cst_20 : f32 to vector<32x640xf32>
    %48 = arith.maximumf %46, %47 : vector<32x640xf32>
    %cst_21 = arith.constant 0.000000e+00 : f32
    %49 = vector.broadcast %cst_21 : f32 to vector<32x1xf32>
    %50 = tpu.concatenate %49, %48, %49 in 1 : vector<32x1xf32>, vector<32x640xf32>, vector<32x1xf32> -> vector<32x642xf32>
    %51 = vector.extract_strided_slice %50 {offsets = [0, 0], sizes = [32, 640], strides = [1, 1]} : vector<32x642xf32> to vector<32x640xf32>
    %52 = vector.extract_strided_slice %50 {offsets = [0, 1], sizes = [32, 640], strides = [1, 1]} : vector<32x642xf32> to vector<32x640xf32>
    %53 = vector.extract_strided_slice %50 {offsets = [0, 2], sizes = [32, 640], strides = [1, 1]} : vector<32x642xf32> to vector<32x640xf32>
    %54 = tpu.concatenate %51, %52, %53, %0 in 0 : vector<32x640xf32>, vector<32x640xf32>, vector<32x640xf32>, vector<1x640xf32> -> vector<97x640xf32>
    %c0_22 = arith.constant 0 : index
    %c0_23 = arith.constant 0 : index
    %55 = vector.load %arg7[%c0_22, %c0_23] : memref<16x97xbf16, #tpu.memory_space<vmem>>, vector<16x97xbf16>
    %56 = arith.truncf %54 : vector<97x640xf32> to vector<97x640xbf16>
    %cst_24 = arith.constant dense<0.000000e+00> : vector<16x640xf32>
    %57 = tpu.matmul %55, %56, %cst_24 {dimension_numbers = #tpu.dot_dimension_numbers<[1], [0], [0], [1], [0, 0, 1, 1], [], []>} : vector<16x97xbf16>, vector<97x640xbf16>, vector<16x640xf32> -> vector<16x640xf32>
    %58 = vector.broadcast %0 : vector<1x640xf32> to vector<16x640xf32>
    %59 = arith.mulf %57, %58 : vector<16x640xf32>
    %cst_25 = arith.constant 0.000000e+00 : f32
    %60 = vector.broadcast %cst_25 : f32 to vector<16x640xf32>
    %61 = arith.maximumf %59, %60 : vector<16x640xf32>
    %62 = tpu.concatenate %61, %0 in 0 : vector<16x640xf32>, vector<1x640xf32> -> vector<17x640xf32>
    %c0_26 = arith.constant 0 : index
    %c0_27 = arith.constant 0 : index
    %63 = vector.load %arg8[%c0_26, %c0_27] : memref<32x17xbf16, #tpu.memory_space<vmem>>, vector<32x17xbf16>
    %64 = arith.truncf %62 : vector<17x640xf32> to vector<17x640xbf16>
    %cst_28 = arith.constant dense<0.000000e+00> : vector<32x640xf32>
    %65 = tpu.matmul %63, %64, %cst_28 {dimension_numbers = #tpu.dot_dimension_numbers<[1], [0], [0], [1], [0, 0, 1, 1], [], []>} : vector<32x17xbf16>, vector<17x640xbf16>, vector<32x640xf32> -> vector<32x640xf32>
    %66 = arith.addf %46, %65 : vector<32x640xf32>
    %cst_29 = arith.constant 0.000000e+00 : f32
    %67 = vector.broadcast %cst_29 : f32 to vector<32x640xf32>
    %68 = arith.maximumf %66, %67 : vector<32x640xf32>
    %c0_30 = arith.constant 0 : index
    %c0_31 = arith.constant 0 : index
    %69 = vector.load %arg9[%c0_30, %c0_31] : memref<32x640xf32, #tpu.memory_space<vmem>>, vector<32x640xf32>
    tpu.vector_store %arg9[%c0_30, %c0_31], %68 {strides = array<i32>} : memref<32x640xf32, #tpu.memory_space<vmem>>, vector<32x640xf32>,
    return
  }
  func.func @transform_0(%arg0: i32) -> (i32, i32) {
    %c0_i32 = arith.constant 0 : i32
    %c0_i32_0 = arith.constant 0 : i32
    return %c0_i32, %arg0 : i32, i32
  }
  func.func @transform_1(%arg0: i32) -> (i32, i32) {
    %c0_i32 = arith.constant 0 : i32
    %c0_i32_0 = arith.constant 0 : i32
    %c0_i32_1 = arith.constant 0 : i32
    return %c0_i32, %c0_i32_0 : i32, i32
  }
  func.func @transform_2(%arg0: i32) -> (i32, i32) {
    %c0_i32 = arith.constant 0 : i32
    %c0_i32_0 = arith.constant 0 : i32
    %c0_i32_1 = arith.constant 0 : i32
    return %c0_i32, %c0_i32_0 : i32, i32
  }
  func.func @transform_3(%arg0: i32) -> (i32, i32) {
    %c0_i32 = arith.constant 0 : i32
    %c0_i32_0 = arith.constant 0 : i32
    %c0_i32_1 = arith.constant 0 : i32
    return %c0_i32, %c0_i32_0 : i32, i32
  }
  func.func @transform_4(%arg0: i32) -> (i32, i32) {
    %c0_i32 = arith.constant 0 : i32
    %c0_i32_0 = arith.constant 0 : i32
    %c0_i32_1 = arith.constant 0 : i32
    return %c0_i32, %c0_i32_0 : i32, i32
  }
  func.func @transform_5(%arg0: i32) -> (i32, i32) {
    %c0_i32 = arith.constant 0 : i32
    %c0_i32_0 = arith.constant 0 : i32
    %c0_i32_1 = arith.constant 0 : i32
    return %c0_i32, %c0_i32_0 : i32, i32
  }
  func.func @transform_6(%arg0: i32) -> (i32, i32) {
    %c0_i32 = arith.constant 0 : i32
    %c0_i32_0 = arith.constant 0 : i32
    %c0_i32_1 = arith.constant 0 : i32
    return %c0_i32, %c0_i32_0 : i32, i32
  }
  func.func @transform_7(%arg0: i32) -> (i32, i32) {
    %c0_i32 = arith.constant 0 : i32
    %c0_i32_0 = arith.constant 0 : i32
    %c0_i32_1 = arith.constant 0 : i32
    return %c0_i32, %c0_i32_0 : i32, i32
  }
  func.func @transform_8(%arg0: i32) -> (i32, i32) {
    %c0_i32 = arith.constant 0 : i32
    %c0_i32_0 = arith.constant 0 : i32
    return %c0_i32, %arg0 : i32, i32
  }
}

</mosaic_0001>

<bundles_post_ra>
// kernel: encoder_forward.1
= control target key start
LH: loop header
LB: loop body
LE: loop exit
PB: predicated region body
PF: predicated region fallthrough
CT: control target
= control target key end

     0   :  { %s2363_s9 = smov 1   ;;  %vm54_vm0 = vcmask 7168   ;;  %s2365_s12 = smov 126   ;;  %vm147_vm1 = vcmask 1043456   ;;  %vm104_vm2 = vcmask 1031168   ;;  %vm148_vm3 = vcmask 1044480   ;;  %s3571_s0 = inlined_call_operand.vmem [shape: bf16[8,640], index: 0, kind: input, shape index: {}]   ;;  %s3572_s1 = inlined_call_operand.vmem [shape: f32[1,640], index: 1, kind: input, shape index: {}]   ;;  %s3573_s2 = inlined_call_operand.vmem [shape: bf16[16,25], index: 2, kind: input, shape index: {}]   ;;  %s3574_s3 = inlined_call_operand.vmem [shape: bf16[32,49], index: 3, kind: input, shape index: {}]   ;;  %s3575_s4 = inlined_call_operand.vmem [shape: bf16[16,97], index: 4, kind: input, shape index: {}]   ;;  %s3576_s5 = inlined_call_operand.vmem [shape: bf16[32,17], index: 5, kind: input, shape index: {}]   ;;  %s3577_s6 = inlined_call_operand.vmem [shape: bf16[16,97], index: 6, kind: input, shape index: {}]   ;;  %s3578_s7 = inlined_call_operand.vmem [shape: bf16[32,17], index: 7, kind: input, shape index: {}]   ;;  %s3579_s8 = inlined_call_operand.vmem [shape: f32[32,640], index: 8, kind: output, shape index: {}]  }
   0x1   :  { %v31_v0 = vld [vmem:[%s3571_s0] sm:$0xff]  ;;  %v32_v1 = vld [vmem:[%s3571_s0 + $0x8] sm:$0xff]  ;;  %v33_v6 = vld [vmem:[%s3571_s0 + $0x10] sm:$0xf]  ;;  %s2364_s0 = smov 127   ;;  %v2366_v26 = vmov 65535  }
   0x2   :  { %v35_v2 = vunpack.c.h.bf16 %v31_v0  ;;  %v36_v3 = vunpack.c.l.bf16 %v32_v1  ;;  %v34_v4 = vunpack.c.l.bf16 %v31_v0  ;;  %v38_v7 = vunpack.c.l.bf16 %v33_v6  ;;  %v30_v23 = vld [vmem:[%s3572_s1] sm:$0x1f]  ;;  %vm2482_vm6 = vmneg %vm54_vm0 }
   0x3   :  { %v37_v8 = vunpack.c.h.bf16 %v32_v1  ;;  %v2458_v25 = vperm.slane %v30_v23, 2  ;;  %v149_v27 = vsel %vm147_vm1, 4294967295, %v2366_v26  ;;  %vm81_vm4 = vcmask 1039360   ;;  %v1896_v39 = vld [vmem:[%s3573_s2] sm:$0xff]  ;;  %vm2622_vm10 = vmpackc.low %vm2482_vm6, %vm2482_vm6 }
   0x4   :  { %v1913_v5 = vpack.i.bf16 %v36_v3, %v35_v2  ;;  %44 = vrot.lane.b32.xlu1 %v34_v4, %s2363_s9  ;;  %v150_v31 = vsel %vm148_vm3, %v149_v27, 0  ;;  %v2466_v40 = vperm.slane %v30_v23, 3  ;;  %vm143_vm5 = vcmask 203776  }
   0x5   :  { %v2471_v46 = vperm.slane %v30_v23, 0  ;;  %v2473_v47 = vperm.slane %v30_v23, 1  ;;  %v2479_v59 = vperm.slane %v30_v23, 4  ;;  %vm2367_vm7 = vmmov 1  }
   0x6   :  { %1914 = vrot.lane.b32.xlu0 %v1913_v5, %s2363_s9  ;;  %vm1791_vm8 = vmpackc.low %vm2367_vm7, %vm2482_vm6  ;;  %vm443_vm9 = vcmask 1040384   ;;  %vm436_vm11 = vcmask 400384   ;;  %vm925_vm12 = vcmask 793600   ;;  %vm1038_vm13 = vcmask 138240  }
   0xc   :  { %52 = vrot.lane.b32.xlu1 %v38_v7, %s2363_s9 }
   0xe   :  { %50 = vrot.lane.b32.xlu0 %v37_v8, %s2363_s9 }
  0x76   :  { %v2427_v9 = vpop.permute.xlu1 %44 }
  0x77   :  { %v65_v12 = vsel %vm54_vm0, 0.0, %v2427_v9 }
  0x78   :  { %v1915_v10 = vpop.permute.xlu0 %1914 }
  0x79   :  { %v1916_v11 = vunpack.i.l.bf16 %v1915_v10  ;;  %v1917_v15 = vunpack.i.h.bf16 %v1915_v10 }
  0x7b   :  { %v2433_v13 = vsel %vm54_vm0, %v2427_v9, %v1916_v11  ;;  %v56_v19 = vsel %vm54_vm0, %v1916_v11, %v1917_v15 }
  0x7c   :  { %v1933_v14 = vpack.i.bf16 %v2433_v13, %v65_v12 }
  0x7e   :  { %1934 = vrot.lane.b32.xlu1 %v1933_v14, %s2364_s0  ;;  %1929 = vrot.lane.b32.xlu0 %v1933_v14, %s2365_s12  ;;  %v53_v17 = vpop.permute.xlu1 %52 }
  0x7f   :  { %v66_v21 = vsel %vm54_vm0, %v53_v17, 0.0 }
  0x80   :  { %v51_v16 = vpop.permute.xlu0 %50 }
  0x81   :  { %v2439_v18 = vsel %vm54_vm0, %v1917_v15, %v51_v16  ;;  %v2445_v22 = vsel %vm54_vm0, %v51_v16, %v53_v17 }
  0x82   :  { %v1918_v20 = vpack.i.bf16 %v2439_v18, %v56_v19 }
  0x84   :  { %1919 = vrot.lane.b32.xlu2 %v1918_v20, %s2365_s12 }
  0x86   :  { %102 = vrot.lane.b32.xlu1 %v66_v21, %s2365_s12  ;;  %77 = vrot.lane.b32.xlu0 %v2445_v22, %s2364_s0 }
  0x8c   :  { %1924 = vrot.lane.b32.xlu2 %v1918_v20, %s2364_s0 }
  0x94   :  { %100 = vrot.lane.b32.xlu2 %v2445_v22, %s2365_s12 }
  0x9c   :  { %79 = vrot.lane.b32.xlu2 %v66_v21, %s2364_s0 }
  0xde   :  { %v1920_v24 = vpop.permute.xlu2 %1919 }
  0xdf   :  { %v1922_v28 = vunpack.i.h.bf16 %v1920_v24  ;;  %v1921_v29 = vunpack.i.l.bf16 %v1920_v24 }
  0xe1   :  { %v107_v30 = vsel %vm104_vm2, %v1921_v29, %v1922_v28 }
  0xe2   :  { %v135_v32 = vpack.c.bf16 %v2458_v25, %v107_v30 }
  0xe4   :  { %v158_v33 = vand.u32 %v150_v31, %v135_v32 }
  0xe6   :  { %v1925_v34 = vpop.permute.xlu2 %1924  ;;  %200 = vmatpush.bf16.msra.mxu2 %v158_v33 }
  0xe7   :  { %v1927_v35 = vunpack.i.h.bf16 %v1925_v34  ;;  %v1926_v36 = vunpack.i.l.bf16 %v1925_v34 }
  0xe9   :  { %v84_v37 = vsel %vm81_vm4, %v1926_v36, %v1927_v35 }
  0xea   :  { %v130_v38 = vpack.c.bf16 %v84_v37, %v56_v19 }
  0xec   :  { %201 = vmatpush.bf16.msra.mxu2 %v130_v38 }
  0xee   :  { %v101_v41 = vpop.permute.xlu2 %100 }
  0xef   :  { %v108_v42 = vsel %vm104_vm2, %v1922_v28, %v101_v41  ;;  %1796 = vmatmul.msk.bf16.vlgmr.msra.gmra.mxu2 %vm143_vm5, %v1896_v39 }
  0xf0   :  { %v1930_v43 = vpop.permute.xlu0 %1929  ;;  %v1935_v44 = vpop.permute.xlu1 %1934  ;;  %v136_v45 = vpack.c.bf16 %v2466_v40, %v108_v42 }
  0xf1   :  { %v1932_v48 = vunpack.i.h.bf16 %v1930_v43  ;;  %v1931_v49 = vunpack.i.l.bf16 %v1930_v43  ;;  %v1937_v51 = vunpack.i.h.bf16 %v1935_v44  ;;  %v1936_v52 = vunpack.i.l.bf16 %v1935_v44 }
  0xf2   :  { %v161_v50 = vand.u32 %v150_v31, %v136_v45 }
  0xf3   :  { %v105_v53 = vsel %vm104_vm2, %v1931_v49, %v1932_v48  ;;  %v106_v54 = vsel %vm104_vm2, %v1932_v48, %v1921_v29  ;;  %v82_v61 = vsel %vm81_vm4, %v1936_v52, %v1937_v51  ;;  %v83_v62 = vsel %vm81_vm4, %v1937_v51, %v1926_v36 }
  0xf4   :  { %214 = vmatpush.bf16.msra.mxu3 %v161_v50  ;;  %v133_v55 = vpack.c.bf16 %v2471_v46, %v105_v53  ;;  %v134_v56 = vpack.c.bf16 %v2473_v47, %v106_v54  ;;  %v1792_v4 = vpack.c.bf16 %v82_v61, %v2427_v9  ;;  %v129_v5 = vpack.c.bf16 %v83_v62, %v2433_v13 }
  0xf6   :  { %v152_v57 = vand.u32 %v150_v31, %v133_v55  ;;  %v155_v58 = vand.u32 %v150_v31, %v134_v56  ;;  %v80_v7 = vpop.permute.xlu2 %79 }
  0xf8   :  { %172 = vmatpush.bf16.msra.mxu0 %v152_v57  ;;  %186 = vmatpush.bf16.msra.mxu1 %v155_v58  ;;  %v78_v63 = vpop.permute.xlu0 %77  ;;  %v103_v0 = vpop.permute.xlu1 %102 }
  0xf9   :  { %v85_v1 = vsel %vm81_vm4, %v1927_v35, %v78_v63  ;;  %v109_v2 = vsel %vm104_vm2, %v101_v41, %v103_v0  ;;  %v86_v10 = vsel %vm81_vm4, %v78_v63, %v80_v7 }
  0xfa   :  { %v137_v3 = vpack.c.bf16 %v2479_v59, %v109_v2  ;;  %v131_v6 = vpack.c.bf16 %v85_v1, %v2439_v18  ;;  %v132_v9 = vpack.c.bf16 %v86_v10, %v2445_v22 }
  0xfc   :  { %1793 = vmatpush.bf16.msk.msra.mxu0 %vm1791_vm8, %v1792_v4  ;;  %187 = vmatpush.bf16.msra.mxu1 %v129_v5  ;;  %v164_v8 = vand.u32 %v150_v31, %v137_v3 }
  0xfd   :  { %215 = vmatpush.bf16.msra.mxu3 %v131_v6 }
  0xff   :  { %1794 = vmatmul.msk.bf16.vlgmr.msra.gmra.mxu0 %vm143_vm5, %v1896_v39  ;;  %1795 = vmatmul.msk.bf16.vlgmr.msra.gmra.mxu1 %vm143_vm5, %v1896_v39 }
 0x100   :  { %228 = vmatpush.bf16.msrb.mxu0 %v164_v8  ;;  %1797 = vmatmul.msk.bf16.vlgmr.msra.gmra.mxu3 %vm143_vm5, %v1896_v39 }
 0x104   :  { %229 = vmatpush.bf16.msrb.mxu0 %v132_v9 }
 0x10f   :  { %1798 = vmatmul.msk.bf16.vlgmr.msrb.gmra.mxu0 %vm143_vm5, %v1896_v39 }
 0x172   :  { %v203_v11 = vpop.f32.mrf.mxu2 }
 0x173   :  { %v238_v20 = vmul.f32 %v203_v11, %v2458_v25 }
 0x175   :  { %v248_v26 = vmax.f32 %v238_v20, 0.0 }
 0x17a   :  { %v205_v16 = vpop.f32.mrf.mxu2 }
 0x17b   :  { %v243_v21 = vmul.f32 %v205_v16, %v2458_v25 }
 0x17c   :  { %v175_v12 = vpop.f32.mrf.mxu0  ;;  %v189_v13 = vpop.f32.mrf.mxu1 }
 0x17d   :  { %v236_v14 = vmul.f32 %v175_v12, %v2471_v46  ;;  %v237_v15 = vmul.f32 %v189_v13, %v2473_v47  ;;  %v253_v29 = vmax.f32 %v243_v21, 0.0 }
 0x17f   :  { %v246_v17 = vmax.f32 %v236_v14, 0.0  ;;  %v247_v18 = vmax.f32 %v237_v15, 0.0 }
 0x181   :  { %v1938_v19 = vpack.i.bf16 %v247_v18, %v246_v17 }
 0x183   :  { %v217_v23 = vpop.f32.mrf.mxu3  ;;  %1939 = vrot.lane.b32.xlu0 %v1938_v19, %s2363_s9 }
 0x184   :  { %v177_v22 = vpop.f32.mrf.mxu0  ;;  %v191_v24 = vpop.f32.mrf.mxu1  ;;  %v239_v32 = vmul.f32 %v217_v23, %v2466_v40 }
 0x185   :  { %v241_v27 = vmul.f32 %v177_v22, %v2471_v46  ;;  %v242_v28 = vmul.f32 %v191_v24, %v2473_v47 }
 0x186   :  { %v249_v36 = vmax.f32 %v239_v32, 0.0 }
 0x187   :  { %v251_v30 = vmax.f32 %v241_v27, 0.0  ;;  %v252_v31 = vmax.f32 %v242_v28, 0.0  ;;  %v421_v27 = vpack.c.bf16 %v2471_v46, %v2471_v46  ;;  %v422_v28 = vpack.c.bf16 %v2473_v47, %v2473_v47 }
 0x189   :  { %v1943_v33 = vpack.i.bf16 %v251_v30, %v248_v26  ;;  %v1948_v34 = vpack.i.bf16 %v253_v29, %v252_v31  ;;  %v2368_v29 = vmov 0   ;;  %v423_v31 = vpack.c.bf16 %v2458_v25, %v2458_v25 }
 0x18a   :  { %v445_v30 = vsel %vm443_vm9, 65535, %v2368_v29  ;;  %v425_v29 = vpack.c.bf16 %v2479_v59, %v2479_v59 }
 0x18b   :  { %v219_v35 = vpop.f32.mrf.mxu3  ;;  %1949 = vrot.lane.b32.xlu2 %v1948_v34, %s2363_s9  ;;  %1944 = vrot.lane.b32.xlu1 %v1943_v33, %s2363_s9  ;;  %v2589_v32 = vand.u32 %v445_v30, %v421_v27  ;;  %v2591_v33 = vand.u32 %v445_v30, %v422_v28  ;;  %v2593_v34 = vand.u32 %v445_v30, %v423_v31 }
 0x18c   :  { %v244_v37 = vmul.f32 %v219_v35, %v2466_v40  ;;  %v231_v38 = vpop.f32.mrf.mxu0 }
 0x18d   :  { %v240_v42 = vmul.f32 %v231_v38, %v2479_v59  ;;  %465 = vmatpush.bf16.msrb.mxu1 %v2589_v32  ;;  %484 = vmatpush.bf16.msrb.mxu2 %v2591_v33 }
 0x18e   :  { %v254_v39 = vmax.f32 %v244_v37, 0.0  ;;  %503 = vmatpush.bf16.msrb.mxu3 %v2593_v34 }
 0x18f   :  { %v250_v44 = vmax.f32 %v240_v42, 0.0 }
 0x190   :  { %v1953_v41 = vpack.i.bf16 %v254_v39, %v249_v36  ;;  %v424_v36 = vpack.c.bf16 %v2466_v40, %v2466_v40 }
 0x192   :  { %1954 = vrot.lane.b32.xlu0 %v1953_v41, %s2363_s9  ;;  %v2600_v37 = vand.u32 %v445_v30, %v424_v36 }
 0x194   :  { %v233_v43 = vpop.f32.mrf.mxu0  ;;  %522 = vmatpush.bf16.msra.mxu0 %v2600_v37 }
 0x195   :  { %v245_v45 = vmul.f32 %v233_v43, %v2479_v59 }
 0x197   :  { %v255_v48 = vmax.f32 %v245_v45, 0.0 }
 0x199   :  { %v1958_v49 = vpack.i.bf16 %v255_v48, %v250_v44 }
 0x19b   :  { %1959 = vrot.lane.b32.xlu1 %v1958_v49, %s2363_s9 }
 0x1e5   :  { %v1950_v53 = vpop.permute.xlu2 %1949 }
 0x1e6   :  { %v1952_v57 = vunpack.i.h.bf16 %v1950_v53  ;;  %v1951_v58 = vunpack.i.l.bf16 %v1950_v53 }
 0x1e8   :  { %v2530_v0 = vsel %vm54_vm0, %v1951_v58, %v1952_v57 }
 0x1f5   :  { %v1940_v50 = vpop.permute.xlu0 %1939 }
 0x1f6   :  { %v1942_v51 = vunpack.i.h.bf16 %v1940_v50  ;;  %v2517_v52 = vunpack.i.l.bf16 %v1940_v50 }
 0x1f8   :  { %v2521_v54 = vsel %vm54_vm0, %v2517_v52, %v1942_v51  ;;  %v306_v55 = vsel %vm54_vm0, 0.0, %v2517_v52 }
 0x1f9   :  { %v1963_v56 = vpack.i.bf16 %v2521_v54, %v306_v55 }
 0x1fb   :  { %1964 = vrot.lane.b32.xlu2 %v1963_v56, %s2365_s12 }
 0x1fd   :  { %v1945_v61 = vpop.permute.xlu1 %1944 }
 0x1fe   :  { %v2527_v62 = vunpack.i.h.bf16 %v1945_v61  ;;  %v1946_v63 = vunpack.i.l.bf16 %v1945_v61 }
 0x200   :  { %v2533_v1 = vsel %vm54_vm0, %v1942_v51, %v1946_v63  ;;  %v307_v2 = vsel %vm54_vm0, 0.0, %v2527_v62  ;;  %v2539_v3 = vsel %vm54_vm0, %v2527_v62, %v1951_v58  ;;  %v1810_v4 = vpack.c.bf16 %v2527_v62, %v2517_v52 }
 0x201   :  { %v1973_v5 = vpack.i.bf16 %v307_v2, %v2533_v1  ;;  %v1983_v6 = vpack.i.bf16 %v2530_v0, %v2539_v3  ;;  %v407_v7 = vpack.c.bf16 %v2539_v3, %v2521_v54  ;;  %v408_v8 = vpack.c.bf16 %v2530_v0, %v2533_v1  ;;  %v1898_v0 = vld [vmem:[%s3574_s3 + $0x8] sm:$0xff] }
 0x203   :  { %1969 = vrot.lane.b32.xlu2 %v1963_v56, %s2364_s0  ;;  %1974 = vrot.lane.b32.xlu0 %v1973_v5, %s2365_s12 }
 0x204   :  { %v1955_v10 = vpop.permute.xlu0 %1954  ;;  %1984 = vrot.lane.b32.xlu1 %v1983_v6, %s2365_s12 }
 0x205   :  { %v1957_v9 = vunpack.i.h.bf16 %v1955_v10  ;;  %v1956_v11 = vunpack.i.l.bf16 %v1955_v10 }
 0x207   :  { %v2554_v12 = vsel %vm54_vm0, %v1946_v63, %v1956_v11  ;;  %v2557_v13 = vsel %vm54_vm0, %v1952_v57, %v1957_v9 }
 0x208   :  { %v409_v14 = vpack.c.bf16 %v2557_v13, %v2554_v12  ;;  %v1993_v15 = vpack.i.bf16 %v2557_v13, %v2554_v12 }
 0x20b   :  { %1994 = vrot.lane.b32.xlu2 %v1993_v15, %s2365_s12  ;;  %1979 = vrot.lane.b32.xlu0 %v1973_v5, %s2364_s0 }
 0x20c   :  { %1989 = vrot.lane.b32.xlu1 %v1983_v6, %s2364_s0 }
 0x20d   :  { %v1960_v16 = vpop.permute.xlu1 %1959 }
 0x20e   :  { %v1962_v17 = vunpack.i.h.bf16 %v1960_v16  ;;  %v1961_v18 = vunpack.i.l.bf16 %v1960_v16 }
 0x210   :  { %v309_v19 = vsel %vm54_vm0, %v1962_v17, 0.0  ;;  %v308_v20 = vsel %vm54_vm0, %v1961_v18, 0.0  ;;  %v2569_v21 = vsel %vm54_vm0, %v1957_v9, %v1962_v17  ;;  %v2572_v23 = vsel %vm54_vm0, %v1956_v11, %v1961_v18 }
 0x211   :  { %v2008_v22 = vpack.i.bf16 %v309_v19, %v2569_v21  ;;  %v2003_v24 = vpack.i.bf16 %v308_v20, %v2572_v23  ;;  %v410_v26 = vpack.c.bf16 %v2569_v21, %v2572_v23 }
 0x213   :  { %1999 = vrot.lane.b32.xlu0 %v1993_v15, %s2364_s0  ;;  %2009 = vrot.lane.b32.xlu2 %v2008_v22, %s2365_s12 }
 0x214   :  { %2004 = vrot.lane.b32.xlu1 %v2003_v24, %s2365_s12 }
 0x21b   :  { %2014 = vrot.lane.b32.xlu0 %v2003_v24, %s2364_s0 }
 0x21c   :  { %2019 = vrot.lane.b32.xlu1 %v2008_v22, %s2364_s0 }
 0x255   :  { %v1965_v35 = vpop.permute.xlu2 %1964 }
 0x256   :  { %v1967_v41 = vunpack.i.h.bf16 %v1965_v35  ;;  %v1966_v42 = vunpack.i.l.bf16 %v1965_v35 }
 0x258   :  { %v382_v57 = vsel %vm104_vm2, %v1966_v42, %v1967_v41  ;;  %v2626_v42 = vand.u32 %v445_v30, %v425_v29 }
 0x25d   :  { %v1970_v38 = vpop.permute.xlu2 %1969 }
 0x25e   :  { %v1972_v10 = vunpack.i.h.bf16 %v1970_v38  ;;  %v1971_v9 = vunpack.i.l.bf16 %v1970_v38 }
 0x260   :  { %v338_v24 = vsel %vm81_vm4, %v1971_v9, %v1972_v10 }
 0x265   :  { %v2603_v39 = vpop.permute.xlu2 %1994 }
 0x266   :  { %v1996_v44 = vunpack.i.l.bf16 %v2603_v39  ;;  %v1997_v50 = vunpack.i.h.bf16 %v2603_v39 }
 0x26d   :  { %v2010_v20 = vpop.permute.xlu2 %2009 }
 0x26e   :  { %v2011_v36 = vunpack.i.l.bf16 %v2010_v20  ;;  %v2012_v38 = vunpack.i.h.bf16 %v2010_v20 }
 0x275   :  { %v1975_v43 = vpop.permute.xlu0 %1974 }
 0x276   :  { %v1977_v45 = vunpack.i.h.bf16 %v1975_v43  ;;  %v1976_v48 = vunpack.i.l.bf16 %v1975_v43  ;;  %v1985_v49 = vpop.permute.xlu1 %1984 }
 0x277   :  { %v1987_v51 = vunpack.i.h.bf16 %v1985_v49  ;;  %v1986_v53 = vunpack.i.l.bf16 %v1985_v49 }
 0x278   :  { %v383_v55 = vsel %vm104_vm2, %v1967_v41, %v1976_v48  ;;  %v384_v56 = vsel %vm104_vm2, %v1976_v48, %v1996_v44 }
 0x279   :  { %v387_v58 = vsel %vm104_vm2, %v1977_v45, %v1986_v53  ;;  %v388_v61 = vsel %vm104_vm2, %v1986_v53, %v1987_v51  ;;  %v389_v63 = vsel %vm104_vm2, %v1987_v51, %v1997_v50  ;;  %v1897_v53 = vld [vmem:[%s3574_s3] sm:$0xff] }
 0x27a   :  { %v416_v2 = vpack.c.bf16 %v387_v58, %v382_v57  ;;  %v417_v5 = vpack.c.bf16 %v388_v61, %v383_v55  ;;  %v418_v6 = vpack.c.bf16 %v389_v63, %v384_v56  ;;  %v390_v55 = vsel %vm104_vm2, %v1997_v50, %v2011_v36 }
 0x27b   :  { %v391_v56 = vsel %vm104_vm2, %v2011_v36, %v2012_v38 }
 0x27c   :  { %466 = vmatpush.bf16.msrb.mxu1 %v416_v2  ;;  %485 = vmatpush.bf16.msrb.mxu2 %v417_v5 }
 0x27d   :  { %504 = vmatpush.bf16.msrb.mxu3 %v418_v6  ;;  %v1980_v11 = vpop.permute.xlu0 %1979 }
 0x27e   :  { %v1982_v15 = vunpack.i.h.bf16 %v1980_v11  ;;  %v1981_v16 = vunpack.i.l.bf16 %v1980_v11  ;;  %v1990_v17 = vpop.permute.xlu1 %1989 }
 0x27f   :  { %v1992_v18 = vunpack.i.h.bf16 %v1990_v17  ;;  %v1991_v19 = vunpack.i.l.bf16 %v1990_v17 }
 0x280   :  { %v339_v22 = vsel %vm81_vm4, %v1972_v10, %v1981_v16 }
 0x281   :  { %v343_v27 = vsel %vm81_vm4, %v1982_v15, %v1991_v19  ;;  %v344_v28 = vsel %vm81_vm4, %v1991_v19, %v1992_v18 }
 0x282   :  { %v411_v31 = vpack.c.bf16 %v343_v27, %v338_v24  ;;  %v412_v35 = vpack.c.bf16 %v344_v28, %v339_v22 }
 0x284   :  { %467 = vmatpush.bf16.msrb.mxu1 %v411_v31  ;;  %486 = vmatpush.bf16.msrb.mxu2 %v412_v35 }
 0x285   :  { %v2000_v41 = vpop.permute.xlu0 %1999 }
 0x286   :  { %v2002_v43 = vunpack.i.h.bf16 %v2000_v41  ;;  %v2001_v45 = vunpack.i.l.bf16 %v2000_v41  ;;  %v2005_v48 = vpop.permute.xlu1 %2004 }
 0x287   :  { %v2007_v49 = vunpack.i.h.bf16 %v2005_v48  ;;  %v2006_v51 = vunpack.i.l.bf16 %v2005_v48 }
 0x288   :  { %1811 = vmatpush.bf16.msk.msrb.mxu1 %vm2622_vm10, %v1810_v4  ;;  %487 = vmatpush.bf16.msrb.mxu2 %v407_v7  ;;  %v340_v60 = vsel %vm81_vm4, %v1981_v16, %v2001_v45  ;;  %v345_v30 = vsel %vm81_vm4, %v1992_v18, %v2002_v43 }
 0x289   :  { %v413_v50 = vpack.c.bf16 %v345_v30, %v340_v60  ;;  %v385_v57 = vsel %vm104_vm2, %v1996_v44, %v2006_v51  ;;  %v386_v52 = vsel %vm104_vm2, %v2006_v51, %v2007_v49 }
 0x28a   :  { %v419_v62 = vpack.c.bf16 %v390_v55, %v385_v57  ;;  %v420_v4 = vpack.c.bf16 %v391_v56, %v386_v52 }
 0x28b   :  { %1812 = vmatmul.msk.bf16.vlgmr.msrb.gmra.mxu1 %vm436_vm11, %v1897_v53  ;;  %1814 = vmatmul.msk.bf16.vlgmr.msrb.gmra.mxu2 %vm436_vm11, %v1897_v53 }
 0x28c   :  { %541 = vmatpush.bf16.msra.mxu1 %v2626_v42  ;;  %930 = vmatpush.bf16.msra.mxu2 %v2589_v32 }
 0x28d   :  { %505 = vmatpush.bf16.msrb.mxu3 %v413_v50  ;;  %523 = vmatpush.bf16.msra.mxu0 %v419_v62  ;;  %v2015_v54 = vpop.permute.xlu0 %2014 }
 0x28e   :  { %v2017_v3 = vunpack.i.h.bf16 %v2015_v54  ;;  %v2016_v7 = vunpack.i.l.bf16 %v2015_v54  ;;  %v2020_v58 = vpop.permute.xlu1 %2019 }
 0x28f   :  { %v2022_v61 = vunpack.i.h.bf16 %v2020_v58  ;;  %v2021_v63 = vunpack.i.l.bf16 %v2020_v58 }
 0x290   :  { %542 = vmatpush.bf16.msra.mxu1 %v420_v4  ;;  %v341_v44 = vsel %vm81_vm4, %v2001_v45, %v2016_v7  ;;  %v342_v2 = vsel %vm81_vm4, %v2016_v7, %v2017_v3 }
 0x291   :  { %506 = vmatpush.bf16.msrb.mxu3 %v408_v8  ;;  %v346_v5 = vsel %vm81_vm4, %v2002_v43, %v2021_v63  ;;  %v347_v6 = vsel %vm81_vm4, %v2021_v63, %v2022_v61 }
 0x292   :  { %v414_v10 = vpack.c.bf16 %v346_v5, %v341_v44  ;;  %v415_v9 = vpack.c.bf16 %v347_v6, %v342_v2 }
 0x294   :  { %1816 = vmatmul.msk.bf16.vlgmr.msrb.gmra.mxu3 %vm436_vm11, %v1897_v53  ;;  %524 = vmatpush.bf16.msra.mxu0 %v414_v10 }
 0x295   :  { %944 = vmatpush.bf16.msra.mxu3 %v2591_v33  ;;  %543 = vmatpush.bf16.msra.mxu1 %v415_v9 }
 0x298   :  { %525 = vmatpush.bf16.msra.mxu0 %v409_v14 }
 0x299   :  { %544 = vmatpush.bf16.msra.mxu1 %v410_v26 }
 0x29b   :  { %1813 = vmatmul.msk.bf16.gmra.mxu1 %vm436_vm11, %v1898_v0  ;;  %1815 = vmatmul.msk.bf16.gmra.mxu2 %vm436_vm11, %v1898_v0 }
 0x29c   :  { %958 = vmatpush.bf16.msrb.mxu0 %v2593_v34 }
 0x29d   :  { %1070 = vmatpush.bf16.msrb.mxu1 %v2591_v33  ;;  %1818 = vmatmul.msk.bf16.vlgmr.msra.gmra.mxu0 %vm436_vm11, %v1897_v53 }
 0x2a4   :  { %1817 = vmatmul.msk.bf16.gmra.mxu3 %vm436_vm11, %v1898_v0 }
 0x2ab   :  { %1820 = vmatmul.msk.bf16.vlgmr.msra.gmra.mxu1 %vm436_vm11, %v1897_v53 }
 0x2ad   :  { %1819 = vmatmul.msk.bf16.gmra.mxu0 %vm436_vm11, %v1898_v0 }
 0x2bb   :  { %1821 = vmatmul.msk.bf16.gmra.mxu1 %vm436_vm11, %v1898_v0 }
 0x308   :  { %v470_v1 = vpop.f32.mrf.mxu1 }
 0x309   :  { %v2677_v8 = vmul.f32 %v470_v1, %v2471_v46 }
 0x30b   :  { %v576_v21 = vmax.f32 %v2677_v8, 0.0 }
 0x30e   :  { %v489_v12 = vpop.f32.mrf.mxu2 }
 0x30f   :  { %v2680_v13 = vmul.f32 %v489_v12, %v2473_v47 }
 0x310   :  { %v472_v14 = vpop.f32.mrf.mxu1 }
 0x311   :  { %v577_v23 = vmax.f32 %v2680_v13, 0.0  ;;  %v2705_v45 = vmul.f32 %v472_v14, %v2471_v46 }
 0x313   :  { %v2023_v26 = vpack.i.bf16 %v577_v23, %v576_v21  ;;  %v581_v30 = vmax.f32 %v2705_v45, 0.0 }
 0x315   :  { %2024 = vrot.lane.b32.xlu1 %v2023_v26, %s2363_s9 }
 0x316   :  { %v491_v11 = vpop.f32.mrf.mxu2 }
 0x317   :  { %v508_v15 = vpop.f32.mrf.mxu3  ;;  %v2702_v38 = vmul.f32 %v491_v11, %v2473_v47 }
 0x318   :  { %v475_v16 = vpop.f32.mrf.mxu1  ;;  %v2686_v17 = vmul.f32 %v508_v15, %v2458_v25 }
 0x319   :  { %v2689_v18 = vmul.f32 %v475_v16, %v2471_v46  ;;  %v582_v55 = vmax.f32 %v2702_v38, 0.0 }
 0x31a   :  { %3618 = vst [vmem:[#allocation2_spill] sm:$0xff] %v2686_v17  ;;  %v527_v19 = vpop.f32.mrf.mxu0  ;;  %v578_v24 = vmax.f32 %v2686_v17, 0.0 }
 0x31b   :  { %v586_v31 = vmax.f32 %v2689_v18, 0.0  ;;  %v2711_v49 = vmul.f32 %v527_v19, %v2466_v40  ;;  %v2033_v7 = vpack.i.bf16 %v582_v55, %v581_v30 }
 0x31d   :  { %3622 = vst [vmem:[#allocation6_spill] sm:$0xff] %v2711_v49  ;;  %v579_v52 = vmax.f32 %v2711_v49, 0.0 }
 0x31e   :  { %v494_v20 = vpop.f32.mrf.mxu2 }
 0x31f   :  { %v510_v22 = vpop.f32.mrf.mxu3  ;;  %v2693_v27 = vmul.f32 %v494_v20, %v2473_v47 }
 0x320   :  { %v2696_v28 = vmul.f32 %v510_v22, %v2458_v25  ;;  %v477_v29 = vpop.f32.mrf.mxu1 }
 0x321   :  { %3619 = vst [vmem:[#allocation3_spill] sm:$0xff] %v2693_v27  ;;  %v587_v35 = vmax.f32 %v2693_v27, 0.0  ;;  %v2708_v48 = vmul.f32 %v477_v29, %v2471_v46 }
 0x322   :  { %3620 = vst [vmem:[#allocation4_spill] sm:$0xff] %v2696_v28  ;;  %v583_v36 = vmax.f32 %v2696_v28, 0.0  ;;  %v529_v56 = vpop.f32.mrf.mxu0 }
 0x323   :  { %v2028_v41 = vpack.i.bf16 %v587_v35, %v586_v31  ;;  %3621 = vst [vmem:[#allocation5_spill] sm:$0xff] %v2708_v48  ;;  %v591_v57 = vmax.f32 %v2708_v48, 0.0  ;;  %v2734_v2 = vmul.f32 %v529_v56, %v2466_v40 }
 0x324   :  { %v2038_v43 = vpack.i.bf16 %v583_v36, %v578_v24 }
 0x325   :  { %2029 = vrot.lane.b32.xlu2 %v2028_v41, %s2363_s9  ;;  %3626 = vst [vmem:[#allocation10_spill] sm:$0xff] %v2734_v2  ;;  %v584_v1 = vmax.f32 %v2734_v2, 0.0 }
 0x326   :  { %2039 = vrot.lane.b32.xlu1 %v2038_v43, %s2363_s9  ;;  %v496_v51 = vpop.f32.mrf.mxu2 }
 0x327   :  { %v513_v53 = vpop.f32.mrf.mxu3  ;;  %v2717_v60 = vmul.f32 %v496_v51, %v2473_v47 }
 0x328   :  { %v546_v50 = vpop.f32.mrf.mxu1  ;;  %v2727_v54 = vmul.f32 %v513_v53, %v2458_v25 }
 0x329   :  { %3623 = vst [vmem:[#allocation7_spill] sm:$0xff] %v2717_v60  ;;  %v592_v62 = vmax.f32 %v2717_v60, 0.0  ;;  %v2724_v4 = vmul.f32 %v546_v50, %v2479_v59 }
 0x32a   :  { %3625 = vst [vmem:[#allocation9_spill] sm:$0xff] %v2727_v54  ;;  %v588_v44 = vmax.f32 %v2727_v54, 0.0  ;;  %v532_v0 = vpop.f32.mrf.mxu0 }
 0x32b   :  { %3624 = vst [vmem:[#allocation8_spill] sm:$0xff] %v2724_v4  ;;  %v580_v3 = vmax.f32 %v2724_v4, 0.0  ;;  %v2048_v58 = vpack.i.bf16 %v592_v62, %v591_v57  ;;  %v2747_v21 = vmul.f32 %v532_v0, %v2466_v40 }
 0x32d   :  { %2034 = vrot.lane.b32.xlu2 %v2033_v7, %s2363_s9  ;;  %2049 = vrot.lane.b32.xlu0 %v2048_v58, %s2363_s9  ;;  %v2043_v61 = vpack.i.bf16 %v580_v3, %v579_v52  ;;  %3629 = vst [vmem:[#allocation13_spill] sm:$0xff] %v2747_v21  ;;  %v589_v11 = vmax.f32 %v2747_v21, 0.0 }
 0x32f   :  { %v515_v63 = vpop.f32.mrf.mxu3  ;;  %2044 = vrot.lane.b32.xlu1 %v2043_v61, %s2363_s9 }
 0x330   :  { %v2737_v5 = vmul.f32 %v515_v63, %v2458_v25  ;;  %v548_v6 = vpop.f32.mrf.mxu1 }
 0x331   :  { %v2742_v9 = vmul.f32 %v548_v6, %v2479_v59 }
 0x332   :  { %3627 = vst [vmem:[#allocation11_spill] sm:$0xff] %v2737_v5  ;;  %v593_v10 = vmax.f32 %v2737_v5, 0.0  ;;  %v534_v19 = vpop.f32.mrf.mxu0 }
 0x333   :  { %3628 = vst [vmem:[#allocation12_spill] sm:$0xff] %v2742_v9  ;;  %v585_v12 = vmax.f32 %v2742_v9, 0.0  ;;  %v2757_v22 = vmul.f32 %v534_v19, %v2466_v40 }
 0x334   :  { %v2053_v14 = vpack.i.bf16 %v593_v10, %v588_v44 }
 0x335   :  { %v2058_v23 = vpack.i.bf16 %v585_v12, %v584_v1  ;;  %3631 = vst [vmem:[#allocation15_spill] sm:$0xff] %v2757_v22  ;;  %v594_v31 = vmax.f32 %v2757_v22, 0.0 }
 0x336   :  { %2054 = vrot.lane.b32.xlu0 %v2053_v14, %s2363_s9 }
 0x337   :  { %2059 = vrot.lane.b32.xlu2 %v2058_v23, %s2363_s9 }
 0x338   :  { %v551_v26 = vpop.f32.mrf.mxu1 }
 0x339   :  { %v2753_v15 = vmul.f32 %v551_v26, %v2479_v59 }
 0x33b   :  { %3630 = vst [vmem:[#allocation14_spill] sm:$0xff] %v2753_v15  ;;  %v590_v16 = vmax.f32 %v2753_v15, 0.0 }
 0x33d   :  { %v2063_v20 = vpack.i.bf16 %v590_v16, %v589_v11 }
 0x33f   :  { %2064 = vrot.lane.b32.xlu2 %v2063_v20, %s2363_s9 }
 0x340   :  { %v553_v24 = vpop.f32.mrf.mxu1 }
 0x341   :  { %v2761_v29 = vmul.f32 %v553_v24, %v2479_v59 }
 0x343   :  { %3632 = vst [vmem:[#allocation16_spill] sm:$0xff] %v2761_v29  ;;  %v595_v35 = vmax.f32 %v2761_v29, 0.0 }
 0x345   :  { %v2068_v36 = vpack.i.bf16 %v595_v35, %v594_v31 }
 0x347   :  { %2069 = vrot.lane.b32.xlu0 %v2068_v36, %s2363_s9 }
 0x37f   :  { %v2030_v41 = vpop.permute.xlu2 %2029 }
 0x380   :  { %v2032_v61 = vunpack.i.h.bf16 %v2030_v41  ;;  %v2787_v63 = vunpack.i.l.bf16 %v2030_v41 }
 0x382   :  { %v2795_v6 = vsel %vm54_vm0, %v2787_v63, %v2032_v61  ;;  %v698_v10 = vsel %vm54_vm0, 0.0, %v2787_v63 }
 0x383   :  { %v2103_v0 = vpack.i.bf16 %v2795_v6, %v698_v10 }
 0x387   :  { %v2035_v43 = vpop.permute.xlu2 %2034  ;;  %v2025_v51 = vpop.permute.xlu1 %2024 }
 0x388   :  { %v2037_v53 = vunpack.i.h.bf16 %v2035_v43  ;;  %v2766_v55 = vunpack.i.l.bf16 %v2035_v43  ;;  %v2027_v30 = vunpack.i.h.bf16 %v2025_v51  ;;  %v2768_v56 = vunpack.i.l.bf16 %v2025_v51 }
 0x38a   :  { %v2774_v57 = vsel %vm54_vm0, %v2766_v55, %v2037_v53  ;;  %v697_v52 = vsel %vm54_vm0, 0.0, %v2766_v55  ;;  %v2780_v62 = vsel %vm54_vm0, %v2768_v56, %v2027_v30  ;;  %v696_v7 = vsel %vm54_vm0, 0.0, %v2768_v56 }
 0x38b   :  { %v2088_v3 = vpack.i.bf16 %v2774_v57, %v697_v52  ;;  %v2073_v44 = vpack.i.bf16 %v2780_v62, %v696_v7 }
 0x38d   :  { %2089 = vrot.lane.b32.xlu1 %v2088_v3, %s2364_s0  ;;  %2074 = vrot.lane.b32.xlu2 %v2073_v44, %s2365_s12 }
 0x38e   :  { %2079 = vrot.lane.b32.xlu0 %v2073_v44, %s2364_s0 }
 0x391   :  { %v2060_v16 = vpop.permute.xlu2 %2059 }
 0x392   :  { %v2062_v31 = vunpack.i.h.bf16 %v2060_v16  ;;  %v2061_v35 = vunpack.i.l.bf16 %v2060_v16 }
 0x394   :  { %v2838_v16 = vsel %vm54_vm0, %v2061_v35, %v2062_v31 }
 0x395   :  { %2104 = vrot.lane.b32.xlu1 %v2103_v0, %s2364_s0 }
 0x396   :  { %2084 = vrot.lane.b32.xlu0 %v2088_v3, %s2365_s12 }
 0x398   :  { %v2040_v1 = vpop.permute.xlu1 %2039 }
 0x399   :  { %v2042_v12 = vunpack.i.h.bf16 %v2040_v1  ;;  %v2041_v14 = vunpack.i.l.bf16 %v2040_v1 }
 0x39b   :  { %v2803_v23 = vsel %vm54_vm0, %v2027_v30, %v2041_v14  ;;  %v2806_v26 = vsel %vm54_vm0, %v2037_v53, %v2042_v12  ;;  %v2835_v1 = vsel %vm54_vm0, %v2042_v12, %v2061_v35 }
 0x39c   :  { %v2098_v7 = vpack.i.bf16 %v2806_v26, %v2803_v23  ;;  %v2138_v11 = vpack.i.bf16 %v2838_v16, %v2835_v1 }
 0x39e   :  { %2094 = vrot.lane.b32.xlu0 %v2103_v0, %s2365_s12 }
 0x39f   :  { %v2050_v19 = vpop.permute.xlu0 %2049 }
 0x3a0   :  { %v2052_v20 = vunpack.i.h.bf16 %v2050_v19  ;;  %v2811_v24 = vunpack.i.l.bf16 %v2050_v19 }
 0x3a1   :  { %v2045_v36 = vpop.permute.xlu1 %2044 }
 0x3a2   :  { %v2047_v43 = vunpack.i.h.bf16 %v2045_v36  ;;  %v2046_v51 = vunpack.i.l.bf16 %v2045_v36  ;;  %v2817_v53 = vsel %vm54_vm0, %v2811_v24, %v2052_v20  ;;  %v699_v30 = vsel %vm54_vm0, 0.0, %v2811_v24 }
 0x3a3   :  { %v2108_v3 = vpack.i.bf16 %v2817_v53, %v699_v30 }
 0x3a4   :  { %v2827_v44 = vsel %vm54_vm0, %v2041_v14, %v2046_v51  ;;  %v2830_v10 = vsel %vm54_vm0, %v2046_v51, %v2047_v43  ;;  %v700_v58 = vsel %vm54_vm0, %v2047_v43, 0.0 }
 0x3a5   :  { %v2118_v0 = vpack.i.bf16 %v2830_v10, %v2827_v44  ;;  %2109 = vrot.lane.b32.xlu1 %v2108_v3, %s2365_s12 }
 0x3a6   :  { %2099 = vrot.lane.b32.xlu0 %v2098_v7, %s2365_s12 }
 0x3a7   :  { %2119 = vrot.lane.b32.xlu2 %v2118_v0, %s2365_s12 }
 0x3a8   :  { %v2055_v36 = vpop.permute.xlu0 %2054 }
 0x3a9   :  { %v2057_v51 = vunpack.i.h.bf16 %v2055_v36  ;;  %v2056_v30 = vunpack.i.l.bf16 %v2055_v36 }
 0x3ab   :  { %v2848_v12 = vsel %vm54_vm0, %v2032_v61, %v2056_v30  ;;  %v2851_v35 = vsel %vm54_vm0, %v2052_v20, %v2057_v51  ;;  %v2065_v61 = vpop.permute.xlu2 %2064 }
 0x3ac   :  { %v2133_v36 = vpack.i.bf16 %v2851_v35, %v2848_v12  ;;  %v2067_v20 = vunpack.i.h.bf16 %v2065_v61  ;;  %v2066_v19 = vunpack.i.l.bf16 %v2065_v61 }
 0x3ad   :  { %2114 = vrot.lane.b32.xlu1 %v2098_v7, %s2364_s0 }
 0x3ae   :  { %2139 = vrot.lane.b32.xlu0 %v2138_v11, %s2365_s12  ;;  %v2866_v7 = vsel %vm54_vm0, %v2056_v30, %v2066_v19  ;;  %v2870_v22 = vsel %vm54_vm0, %v2066_v19, %v2067_v20  ;;  %v702_v19 = vsel %vm54_vm0, %v2067_v20, 0.0 }
 0x3af   :  { %2124 = vrot.lane.b32.xlu2 %v2108_v3, %s2364_s0  ;;  %v701_v3 = vsel %vm54_vm0, %v2062_v31, 0.0  ;;  %v2148_v43 = vpack.i.bf16 %v2870_v22, %v2866_v7 }
 0x3b0   :  { %v2143_v41 = vpack.i.bf16 %v701_v3, %v700_v58 }
 0x3b5   :  { %2134 = vrot.lane.b32.xlu1 %v2133_v36, %s2364_s0 }
 0x3b7   :  { %2129 = vrot.lane.b32.xlu2 %v2133_v36, %s2365_s12 }
 0x3b9   :  { %v2070_v52 = vpop.permute.xlu0 %2069 }
 0x3ba   :  { %v2072_v14 = vunpack.i.h.bf16 %v2070_v52  ;;  %v2071_v50 = vunpack.i.l.bf16 %v2070_v52 }
 0x3bc   :  { %v2873_v29 = vsel %vm54_vm0, %v2057_v51, %v2071_v50  ;;  %v2876_v36 = vsel %vm54_vm0, %v2071_v50, %v2072_v14  ;;  %v703_v50 = vsel %vm54_vm0, %v2072_v14, 0.0 }
 0x3bd   :  { %v2163_v52 = vpack.i.bf16 %v2876_v36, %v2873_v29  ;;  %2144 = vrot.lane.b32.xlu1 %v2143_v41, %s2365_s12  ;;  %v2168_v51 = vpack.i.bf16 %v703_v50, %v702_v19 }
 0x3bf   :  { %2149 = vrot.lane.b32.xlu2 %v2148_v43, %s2365_s12  ;;  %2164 = vrot.lane.b32.xlu0 %v2163_v52, %s2365_s12 }
 0x3c5   :  { %2169 = vrot.lane.b32.xlu1 %v2168_v51, %s2365_s12 }
 0x3c7   :  { %2154 = vrot.lane.b32.xlu2 %v2148_v43, %s2364_s0  ;;  %2174 = vrot.lane.b32.xlu0 %v2163_v52, %s2364_s0 }
 0x3cd   :  { %2184 = vrot.lane.b32.xlu1 %v2168_v51, %s2364_s0 }
 0x3cf   :  { %2159 = vrot.lane.b32.xlu2 %v2118_v0, %s2364_s0  ;;  %2179 = vrot.lane.b32.xlu0 %v2138_v11, %s2364_s0 }
 0x3d7   :  { %2189 = vrot.lane.b32.xlu2 %v2143_v41, %s2364_s0 }
 0x3e7   :  { %v2075_v30 = vpop.permute.xlu2 %2074 }
 0x3e8   :  { %v2077_v9 = vunpack.i.h.bf16 %v2075_v30  ;;  %v2076_v49 = vunpack.i.l.bf16 %v2075_v30 }
 0x3ff   :  { %v2902_v20 = vpop.permute.xlu1 %2089 }
 0x400   :  { %v2898_v61 = vpop.permute.xlu0 %2079 }
 0x401   :  { %v2900_v14 = vpop.permute.xlu2 %2119 }
 0x407   :  { %v2105_v43 = vpop.permute.xlu1 %2104 }
 0x408   :  { %v2085_v3 = vpop.permute.xlu0 %2084 }
 0x409   :  { %v2125_v50 = vpop.permute.xlu2 %2124  ;;  %v2087_v11 = vunpack.i.h.bf16 %v2085_v3  ;;  %v2086_v58 = vunpack.i.l.bf16 %v2085_v3 }
 0x40a   :  { %v2127_v60 = vunpack.i.h.bf16 %v2125_v50  ;;  %v2126_v2 = vunpack.i.l.bf16 %v2125_v50 }
 0x40b   :  { %v853_v4 = vsel %vm104_vm2, %v2086_v58, %v2087_v11 }
 0x410   :  { %v2095_v19 = vpop.permute.xlu0 %2094 }
 0x411   :  { %v2904_v52 = vpop.permute.xlu2 %2129  ;;  %v2097_v51 = vunpack.i.h.bf16 %v2095_v19  ;;  %v2096_v31 = vunpack.i.l.bf16 %v2095_v19 }
 0x412   :  { %v3595_v0 = vunpack.i.l.bf16 %v2904_v52  ;;  %v2132_v41 = vunpack.i.h.bf16 %v2904_v52 }
 0x413   :  { %v858_v28 = vsel %vm104_vm2, %v2096_v31, %v2097_v51 }
 0x414   :  { %v859_v3 = vsel %vm104_vm2, %v2097_v51, %v3595_v0  ;;  %v2107_v51 = vunpack.i.h.bf16 %v2105_v43  ;;  %v2106_v0 = vunpack.i.l.bf16 %v2105_v43 }
 0x417   :  { %v2110_v5 = vpop.permute.xlu1 %2109 }
 0x418   :  { %v2908_v21 = vpop.permute.xlu0 %2099  ;;  %v2112_v54 = vunpack.i.h.bf16 %v2110_v5  ;;  %v2111_v15 = vunpack.i.l.bf16 %v2110_v5 }
 0x419   :  { %v3633_v30 = vunpack.i.l.bf16 %v2908_v21 }
 0x41a   :  { %v863_v19 = vsel %vm104_vm2, %v2111_v15, %v2112_v54  ;;  %v864_v17 = vsel %vm104_vm2, %v2112_v54, %v2132_v41  ;;  %v3634_v15 = vunpack.i.h.bf16 %v2908_v21  ;;  %v848_v54 = vsel %vm104_vm2, %v2076_v49, %v2077_v9 }
 0x41b   :  { %v915_v5 = vpack.c.bf16 %v863_v19, %v858_v28  ;;  %v916_v48 = vpack.c.bf16 %v864_v17, %v859_v3  ;;  %v849_v31 = vsel %vm104_vm2, %v2077_v9, %v3633_v30  ;;  %v2092_v28 = vunpack.i.h.bf16 %v2902_v20 }
 0x41c   :  { %v854_v27 = vsel %vm104_vm2, %v2087_v11, %v3634_v15  ;;  %v910_v50 = vpack.c.bf16 %v853_v4, %v848_v54  ;;  %v2091_v19 = vunpack.i.l.bf16 %v2902_v20  ;;  %v2082_v3 = vunpack.i.h.bf16 %v2898_v61 }
 0x41d   :  { %931 = vmatpush.bf16.msra.mxu2 %v915_v5  ;;  %945 = vmatpush.bf16.msra.mxu3 %v916_v48  ;;  %v911_v58 = vpack.c.bf16 %v854_v27, %v849_v31  ;;  %v2081_v30 = vunpack.i.l.bf16 %v2898_v61  ;;  %v775_v11 = vsel %vm81_vm4, %v2126_v2, %v2127_v60  ;;  %v2935_v5 = vpop.permute.xlu2 %2149  ;;  %v770_v48 = vsel %vm81_vm4, %v2106_v0, %v2107_v51 }
 0x41e   :  { %v905_v49 = vpack.c.bf16 %v775_v11, %v770_v48  ;;  %v765_v4 = vsel %vm81_vm4, %v2091_v19, %v2092_v28  ;;  %v3635_v11 = vpack.c.bf16 %v2811_v24, %v2787_v63  ;;  %v3636_v24 = vpack.c.bf16 %v2766_v55, %v2768_v56 }
 0x41f   :  { %v2929_v17 = vpop.permute.xlu1 %2114  ;;  %v760_v9 = vsel %vm81_vm4, %v2081_v30, %v2082_v3 }
 0x420   :  { %v900_v20 = vpack.c.bf16 %v765_v4, %v760_v9  ;;  %v2117_v43 = vunpack.i.h.bf16 %v2929_v17  ;;  %v2116_v61 = vunpack.i.l.bf16 %v2929_v17  ;;  %v2944_v2 = vpop.permute.xlu0 %2139  ;;  %v3643_v17 = vpack.c.bf16 %v2873_v29, %v2866_v7 }
 0x421   :  { %932 = vmatpush.bf16.msra.mxu2 %v910_v50  ;;  %946 = vmatpush.bf16.msra.mxu3 %v911_v58  ;;  %v2141_v63 = vunpack.i.l.bf16 %v2944_v2 }
 0x422   :  { %v761_v19 = vsel %vm81_vm4, %v2082_v3, %v2116_v61  ;;  %v766_v30 = vsel %vm81_vm4, %v2092_v28, %v2117_v43  ;;  %v2972_v3 = vld [vmem:[%s3575_s4] sm:$0xff]  ;;  %v2142_v28 = vunpack.i.h.bf16 %v2944_v2 }
 0x425   :  { %933 = vmatpush.bf16.msra.mxu2 %v905_v49  ;;  %v2954_v50 = vpop.permute.xlu2 %2154  ;;  %v901_v49 = vpack.c.bf16 %v766_v30, %v761_v19 }
 0x427   :  { %v2940_v27 = vpop.permute.xlu1 %2134 }
 0x428   :  { %v2137_v31 = vunpack.i.h.bf16 %v2940_v27  ;;  %v2136_v15 = vunpack.i.l.bf16 %v2940_v27 }
 0x429   :  { %934 = vmatpush.bf16.msra.mxu2 %v900_v20  ;;  %v2122_v20 = vunpack.i.h.bf16 %v2900_v14 }
 0x42a   :  { %v771_v0 = vsel %vm81_vm4, %v2107_v51, %v2136_v15  ;;  %v776_v54 = vsel %vm81_vm4, %v2127_v60, %v2137_v31  ;;  %v2152_v60 = vunpack.i.h.bf16 %v2935_v5  ;;  %v2151_v51 = vunpack.i.l.bf16 %v2935_v5 }
 0x42b   :  { %v906_v58 = vpack.c.bf16 %v776_v54, %v771_v0  ;;  %v2121_v0 = vunpack.i.l.bf16 %v2900_v14  ;;  %v3637_v54 = vunpack.i.l.bf16 %v2904_v52 }
 0x42c   :  { %v861_v56 = vsel %vm104_vm2, %v2151_v51, %v2152_v60 }
 0x42d   :  { %1830 = vmatpush.bf16.msk.msra.mxu2 %vm2622_vm10, %v3635_v11  ;;  %947 = vmatpush.bf16.msra.mxu3 %v906_v58  ;;  %v860_v58 = vsel %vm104_vm2, %v3637_v54, %v2151_v51  ;;  %v2994_v14 = vpop.permute.xlu2 %2159  ;;  %v3638_v11 = vpack.c.bf16 %v2817_v53, %v2795_v6  ;;  %v2157_v51 = vunpack.i.h.bf16 %v2954_v50  ;;  %v851_v6 = vsel %vm104_vm2, %v2121_v0, %v2122_v20 }
 0x42f   :  { %v2145_v48 = vpop.permute.xlu1 %2144 }
 0x431   :  { %v2165_v9 = vpop.permute.xlu0 %2164  ;;  %1835 = vmatpush.bf16.msk.msra.mxu2 %vm2622_vm10, %v3636_v24  ;;  %948 = vmatpush.bf16.msra.mxu3 %v901_v49  ;;  %v3639_v49 = vunpack.i.h.bf16 %v2908_v21 }
 0x432   :  { %v2167_v5 = vunpack.i.h.bf16 %v2165_v9  ;;  %v2166_v4 = vunpack.i.l.bf16 %v2165_v9  ;;  %v2156_v9 = vunpack.i.l.bf16 %v2954_v50 }
 0x433   :  { %v855_v52 = vsel %vm104_vm2, %v3639_v49, %v2141_v63  ;;  %v3641_v49 = vpack.c.bf16 %v2774_v57, %v2780_v62 }
 0x434   :  { %v865_v55 = vsel %vm104_vm2, %v2132_v41, %v2166_v4  ;;  %v866_v2 = vsel %vm104_vm2, %v2166_v4, %v2167_v5  ;;  %1836 = vmatmul.msk.bf16.vlgmr.msra.gmra.mxu2 %vm925_vm12, %v2972_v3  ;;  %v856_v41 = vsel %vm104_vm2, %v2141_v63, %v2142_v28  ;;  %v3640_v4 = vunpack.i.l.bf16 %v2908_v21 }
 0x435   :  { %972 = vmatpush.bf16.msrb.mxu2 %v2600_v37  ;;  %v917_v19 = vpack.c.bf16 %v865_v55, %v860_v58  ;;  %v918_v30 = vpack.c.bf16 %v866_v2, %v861_v56  ;;  %949 = vmatpush.bf16.msra.mxu3 %v3638_v11  ;;  %v913_v2 = vpack.c.bf16 %v856_v41, %v851_v6  ;;  %v2147_v11 = vunpack.i.h.bf16 %v2145_v48  ;;  %v2190_v27 = vpop.permute.xlu2 %2189 }
 0x436   :  { %v850_v54 = vsel %vm104_vm2, %v3640_v4, %v2121_v0  ;;  %v2146_v63 = vunpack.i.l.bf16 %v2145_v48  ;;  %v772_v48 = vsel %vm81_vm4, %v2136_v15, %v2156_v9 }
 0x437   :  { %959 = vmatpush.bf16.msrb.mxu0 %v917_v19  ;;  %v2170_v24 = vpop.permute.xlu1 %2169  ;;  %v912_v56 = vpack.c.bf16 %v855_v52, %v850_v54  ;;  %v857_v4 = vsel %vm104_vm2, %v2142_v28, %v2147_v11  ;;  %v2162_v54 = vunpack.i.h.bf16 %v2994_v14  ;;  %v2191_v11 = vunpack.i.l.bf16 %v2190_v27 }
 0x438   :  { %v2172_v53 = vunpack.i.h.bf16 %v2170_v24  ;;  %v2171_v58 = vunpack.i.l.bf16 %v2170_v24  ;;  %v852_v24 = vsel %vm104_vm2, %v2122_v20, %v2146_v63  ;;  %v2192_v20 = vunpack.i.h.bf16 %v2190_v27 }
 0x439   :  { %973 = vmatpush.bf16.msrb.mxu2 %v918_v30  ;;  %v2175_v55 = vpop.permute.xlu0 %2174  ;;  %950 = vmatpush.bf16.msra.mxu3 %v3641_v49  ;;  %v773_v30 = vsel %vm81_vm4, %v2156_v9, %v2157_v51 }
 0x43a   :  { %v2177_v50 = vunpack.i.h.bf16 %v2175_v55  ;;  %v2176_v19 = vunpack.i.l.bf16 %v2175_v55  ;;  %v862_v21 = vsel %vm104_vm2, %v2152_v60, %v2171_v58  ;;  %v867_v0 = vsel %vm104_vm2, %v2167_v5, %v2172_v53 }
 0x43b   :  { %960 = vmatpush.bf16.msrb.mxu0 %v912_v56  ;;  %v919_v52 = vpack.c.bf16 %v867_v0, %v862_v21  ;;  %v2161_v5 = vunpack.i.l.bf16 %v2994_v14  ;;  %v914_v53 = vpack.c.bf16 %v857_v4, %v852_v24  ;;  %v1901_v4 = vld [vmem:[%s3576_s5 + $0x8] sm:$0xff] }
 0x43c   :  { %v777_v57 = vsel %vm81_vm4, %v2137_v31, %v2176_v19  ;;  %v778_v62 = vsel %vm81_vm4, %v2176_v19, %v2177_v50  ;;  %1837 = vmatmul.msk.bf16.vlgmr.msra.gmra.mxu3 %vm925_vm12, %v2972_v3 }
 0x43d   :  { %986 = vmatpush.bf16.msrb.mxu3 %v2626_v42  ;;  %974 = vmatpush.bf16.msrb.mxu2 %v913_v2  ;;  %v907_v60 = vpack.c.bf16 %v777_v57, %v772_v48  ;;  %v908_v41 = vpack.c.bf16 %v778_v62, %v773_v30  ;;  %v762_v56 = vsel %vm81_vm4, %v2116_v61, %v2161_v5 }
 0x43e   :  { %v763_v2 = vsel %vm81_vm4, %v2161_v5, %v2162_v54  ;;  %v3642_v30 = vpack.c.bf16 %v2851_v35, %v2848_v12  ;;  %v3646_v48 = vpack.c.bf16 %v2835_v1, %v2827_v44 }
 0x43f   :  { %961 = vmatpush.bf16.msrb.mxu0 %v907_v60  ;;  %v2185_v15 = vpop.permute.xlu1 %2184 }
 0x440   :  { %v2187_v31 = vunpack.i.h.bf16 %v2185_v15  ;;  %v2186_v9 = vunpack.i.l.bf16 %v2185_v15 }
 0x441   :  { %987 = vmatpush.bf16.msrb.mxu3 %v919_v52  ;;  %975 = vmatpush.bf16.msrb.mxu2 %v908_v41  ;;  %v2180_v6 = vpop.permute.xlu0 %2179  ;;  %v3645_v52 = vpack.c.bf16 %v2806_v26, %v2803_v23 }
 0x442   :  { %v2182_v58 = vunpack.i.h.bf16 %v2180_v6  ;;  %v2181_v55 = vunpack.i.l.bf16 %v2180_v6  ;;  %v774_v28 = vsel %vm81_vm4, %v2157_v51, %v2186_v9  ;;  %v779_v14 = vsel %vm81_vm4, %v2177_v50, %v2187_v31 }
 0x443   :  { %v909_v63 = vpack.c.bf16 %v779_v14, %v774_v28  ;;  %v764_v51 = vsel %vm81_vm4, %v2162_v54, %v2191_v11 }
 0x444   :  { %v767_v49 = vsel %vm81_vm4, %v2117_v43, %v2181_v55  ;;  %v768_v19 = vsel %vm81_vm4, %v2181_v55, %v2182_v58  ;;  %v769_v61 = vsel %vm81_vm4, %v2182_v58, %v2192_v20  ;;  %v3644_v43 = vpack.c.bf16 %v2876_v36, %v2870_v22 }
 0x445   :  { %988 = vmatpush.bf16.msrb.mxu3 %v914_v53  ;;  %v902_v21 = vpack.c.bf16 %v767_v49, %v762_v56  ;;  %v903_v0 = vpack.c.bf16 %v768_v19, %v763_v2  ;;  %v904_v50 = vpack.c.bf16 %v769_v61, %v764_v51  ;;  %v3647_v22 = vpack.c.bf16 %v2838_v16, %v2830_v10  ;;  %v1900_v10 = vld [vmem:[%s3576_s5] sm:$0xff] }
 0x447   :  { %962 = vmatpush.bf16.msrb.mxu0 %v902_v21  ;;  %976 = vmatpush.bf16.msrb.mxu2 %v903_v0 }
 0x449   :  { %989 = vmatpush.bf16.msrb.mxu3 %v909_v63 }
 0x44b   :  { %963 = vmatpush.bf16.msrb.mxu0 %v3642_v30  ;;  %977 = vmatpush.bf16.msrb.mxu2 %v3643_v17 }
 0x44d   :  { %990 = vmatpush.bf16.msrb.mxu3 %v904_v50 }
 0x44f   :  { %964 = vmatpush.bf16.msrb.mxu0 %v3645_v52  ;;  %978 = vmatpush.bf16.msrb.mxu2 %v3646_v48 }
 0x451   :  { %991 = vmatpush.bf16.msrb.mxu3 %v3644_v43 }
 0x452   :  { %1838 = vmatmul.msk.bf16.vlgmr.msrb.gmra.mxu0 %vm925_vm12, %v2972_v3  ;;  %1839 = vmatmul.msk.bf16.vlgmr.msrb.gmra.mxu2 %vm925_vm12, %v2972_v3 }
 0x453   :  { %1051 = vmatpush.bf16.msra.mxu0 %v2589_v32  ;;  %1089 = vmatpush.bf16.msra.mxu2 %v2593_v34 }
 0x455   :  { %992 = vmatpush.bf16.msrb.mxu3 %v3647_v22 }
 0x458   :  { %1840 = vmatmul.msk.bf16.vlgmr.msrb.gmra.mxu3 %vm925_vm12, %v2972_v3 }
 0x459   :  { %1108 = vmatpush.bf16.msra.mxu3 %v2600_v37 }
 0x4b7   :  { %v938_v29 = vpop.f32.mrf.mxu2 }
 0x4b8   :  { %v999_v23 = vmul.f32 %v938_v29, %v2471_v46 }
 0x4ba   :  { %v1009_v1 = vmax.f32 %v999_v23, 0.0 }
 0x4bf   :  { %v940_v26 = vpop.f32.mrf.mxu2  ;;  %v952_v44 = vpop.f32.mrf.mxu3 }
 0x4c0   :  { %v1004_v12 = vmul.f32 %v940_v26, %v2471_v46  ;;  %v1000_v36 = vmul.f32 %v952_v44, %v2473_v47 }
 0x4c2   :  { %v1014_v35 = vmax.f32 %v1004_v12, 0.0  ;;  %v1010_v3 = vmax.f32 %v1000_v36, 0.0 }
 0x4c4   :  { %v1023_v7 = vpack.c.bf16 %v1014_v35, %v1009_v1  ;;  %v3649_v1 = vld [vmem:[#allocation3_spill] sm:$0xff] }
 0x4c6   :  { %1052 = vmatpush.bf16.msra.mxu0 %v1023_v7 }
 0x4c7   :  { %v954_v16 = vpop.f32.mrf.mxu3 }
 0x4c8   :  { %v1005_v57 = vmul.f32 %v954_v16, %v2473_v47 }
 0x4c9   :  { %1849 = vmatmul.msk.bf16.vlgmr.msra.gmra.mxu0 %vm1038_vm13, %v1900_v10 }
 0x4ca   :  { %1127 = vmatpush.bf16.msrb.mxu0 %v2626_v42  ;;  %v1015_v62 = vmax.f32 %v1005_v57, 0.0 }
 0x4cc   :  { %v1024_v60 = vpack.c.bf16 %v1015_v62, %v1010_v3  ;;  %v3652_v3 = vld [vmem:[#allocation7_spill] sm:$0xff] }
 0x4ce   :  { %1071 = vmatpush.bf16.msrb.mxu1 %v1024_v60 }
 0x4cf   :  { %v966_v41 = vpop.f32.mrf.mxu0 }
 0x4d0   :  { %v1001_v5 = vmul.f32 %v966_v41, %v2458_v25 }
 0x4d1   :  { %1851 = vmatmul.msk.bf16.vlgmr.msrb.gmra.mxu1 %vm1038_vm13, %v1900_v10 }
 0x4d2   :  { %1513 = vmatpush.bf16.msra.mxu1 %v2589_v32  ;;  %v1011_v31 = vmax.f32 %v1001_v5, 0.0  ;;  %v3654_v5 = vld [vmem:[#allocation2_spill] sm:$0xff] }
 0x4d5   :  { %v980_v24 = vpop.f32.mrf.mxu2 }
 0x4d6   :  { %v1002_v6 = vmul.f32 %v980_v24, %v2466_v40 }
 0x4d7   :  { %v968_v54 = vpop.f32.mrf.mxu0 }
 0x4d8   :  { %v1006_v27 = vmul.f32 %v968_v54, %v2458_v25  ;;  %v1012_v56 = vmax.f32 %v1002_v6, 0.0 }
 0x4d9   :  { %1850 = vmatmul.msk.bf16.gmra.mxu0 %vm1038_vm13, %v1901_v4 }
 0x4da   :  { %v1016_v9 = vmax.f32 %v1006_v27, 0.0 }
 0x4db   :  { %v994_v15 = vpop.f32.mrf.mxu3 }
 0x4dc   :  { %v1025_v53 = vpack.c.bf16 %v1016_v9, %v1011_v31  ;;  %v1003_v58 = vmul.f32 %v994_v15, %v2479_v59  ;;  %v3656_v15 = vld [vmem:[#allocation4_spill] sm:$0xff] }
 0x4dd   :  { %v982_v55 = vpop.f32.mrf.mxu2 }
 0x4de   :  { %1090 = vmatpush.bf16.msra.mxu2 %v1025_v53  ;;  %v1007_v20 = vmul.f32 %v982_v55, %v2466_v40  ;;  %v1013_v2 = vmax.f32 %v1003_v58, 0.0  ;;  %v3658_v58 = vld [vmem:[#allocation6_spill] sm:$0xff] }
 0x4e0   :  { %v1017_v28 = vmax.f32 %v1007_v20, 0.0  ;;  %v3660_v20 = vld [vmem:[#allocation12_spill] sm:$0xff] }
 0x4e1   :  { %1853 = vmatmul.msk.bf16.vlgmr.msra.gmra.mxu2 %vm1038_vm13, %v1900_v10  ;;  %1852 = vmatmul.msk.bf16.gmra.mxu1 %vm1038_vm13, %v1901_v4 }
 0x4e2   :  { %1527 = vmatpush.bf16.msrb.mxu2 %v2591_v33  ;;  %v1026_v63 = vpack.c.bf16 %v1017_v28, %v1012_v56 }
 0x4e3   :  { %v996_v14 = vpop.f32.mrf.mxu3 }
 0x4e4   :  { %v1008_v11 = vmul.f32 %v996_v14, %v2479_v59  ;;  %1109 = vmatpush.bf16.msra.mxu3 %v1026_v63  ;;  %v3662_v14 = vld [vmem:[#allocation8_spill] sm:$0xff]  ;;  %v3664_v63 = vld [vmem:[#allocation10_spill] sm:$0xff] }
 0x4e6   :  { %v1018_v49 = vmax.f32 %v1008_v11, 0.0 }
 0x4e7   :  { %1855 = vmatmul.msk.bf16.vlgmr.msra.gmra.mxu3 %vm1038_vm13, %v1900_v10 }
 0x4e8   :  { %v1027_v19 = vpack.c.bf16 %v1018_v49, %v1013_v2  ;;  %1541 = vmatpush.bf16.msrb.mxu3 %v2593_v34 }
 0x4ea   :  { %1128 = vmatpush.bf16.msrb.mxu0 %v1027_v19 }
 0x4ed   :  { %1857 = vmatmul.msk.bf16.vlgmr.msrb.gmra.mxu0 %vm1038_vm13, %v1900_v10  ;;  %v3651_v10 = vld [vmem:[#allocation5_spill] sm:$0xff] }
 0x4ee   :  { %1569 = vmatpush.bf16.msra.mxu0 %v2626_v42 }
 0x4f1   :  { %1854 = vmatmul.msk.bf16.gmra.mxu2 %vm1038_vm13, %v1901_v4 }
 0x4f7   :  { %1856 = vmatmul.msk.bf16.gmra.mxu3 %vm1038_vm13, %v1901_v4 }
 0x4fd   :  { %1858 = vmatmul.msk.bf16.gmra.mxu0 %vm1038_vm13, %v1901_v4 }
 0x546   :  { %v1054_v21 = vpop.f32.mrf.mxu0 }
 0x547   :  { %v3100_v0 = vadd.f32 %v1054_v21, %v2677_v8 }
 0x549   :  { %v1160_v30 = vmax.f32 %v3100_v0, 0.0 }
 0x54e   :  { %v1056_v61 = vpop.f32.mrf.mxu0  ;;  %v1073_v51 = vpop.f32.mrf.mxu1 }
 0x54f   :  { %v3103_v50 = vadd.f32 %v1073_v51, %v2680_v13  ;;  %v3108_v52 = vadd.f32 %v1056_v61, %v2705_v45 }
 0x551   :  { %v1161_v17 = vmax.f32 %v3103_v50, 0.0  ;;  %v1165_v29 = vmax.f32 %v3108_v52, 0.0 }
 0x553   :  { %v2193_v43 = vpack.i.bf16 %v1161_v17, %v1160_v30 }
 0x555   :  { %2194 = vrot.lane.b32.xlu2 %v2193_v43, %s2363_s9 }
 0x556   :  { %v1059_v48 = vpop.f32.mrf.mxu0  ;;  %v1075_v22 = vpop.f32.mrf.mxu1 }
 0x557   :  { %v3112_v8 = vadd.f32 %v1075_v22, %v2702_v38  ;;  %v3117_v26 = vadd.f32 %v1059_v48, %v2689_v18  ;;  %v3666_v22 = vld [vmem:[#allocation14_spill] sm:$0xff] }
 0x559   :  { %3648 = vst [vmem:[#allocation17_spill] sm:$0xff] %v3112_v8  ;;  %v1166_v13 = vmax.f32 %v3112_v8, 0.0  ;;  %v1170_v35 = vmax.f32 %v3117_v26, 0.0 }
 0x55b   :  { %v2198_v23 = vpack.i.bf16 %v1166_v13, %v1165_v29  ;;  %v3668_v13 = vld [vmem:[#allocation9_spill] sm:$0xff] }
 0x55d   :  { %2199 = vrot.lane.b32.xlu0 %v2198_v23, %s2363_s9 }
 0x55e   :  { %v1061_v44 = vpop.f32.mrf.mxu0  ;;  %v1078_v45 = vpop.f32.mrf.mxu1 }
 0x55f   :  { %v3121_v12 = vadd.f32 %v1078_v45, %v3649_v1  ;;  %v3126_v16 = vadd.f32 %v1061_v44, %v3651_v10  ;;  %v3670_v45 = vld [vmem:[#allocation13_spill] sm:$0xff] }
 0x561   :  { %3650 = vst [vmem:[#allocation3_spill] sm:$0xff] %v3121_v12  ;;  %v1171_v38 = vmax.f32 %v3121_v12, 0.0  ;;  %v1175_v60 = vmax.f32 %v3126_v16, 0.0 }
 0x563   :  { %v2208_v36 = vpack.i.bf16 %v1171_v38, %v1170_v35  ;;  %v3672_v38 = vld [vmem:[#allocation11_spill] sm:$0xff] }
 0x564   :  { %v1092_v7 = vpop.f32.mrf.mxu2 }
 0x565   :  { %2209 = vrot.lane.b32.xlu0 %v2208_v36, %s2363_s9  ;;  %v3135_v24 = vadd.f32 %v1092_v7, %v3654_v5  ;;  %v3674_v5 = vld [vmem:[#allocation16_spill] sm:$0xff] }
 0x566   :  { %v1080_v18 = vpop.f32.mrf.mxu1 }
 0x567   :  { %v3130_v57 = vadd.f32 %v1080_v18, %v3652_v3  ;;  %3655 = vst [vmem:[#allocation7_spill] sm:$0xff] %v3135_v24  ;;  %v1162_v9 = vmax.f32 %v3135_v24, 0.0 }
 0x569   :  { %3653 = vst [vmem:[#allocation5_spill] sm:$0xff] %v3130_v57  ;;  %v1176_v41 = vmax.f32 %v3130_v57, 0.0 }
 0x56a   :  { %v1130_v62 = vpop.f32.mrf.mxu0  ;;  %v1111_v4 = vpop.f32.mrf.mxu3 }
 0x56b   :  { %v2213_v27 = vpack.i.bf16 %v1176_v41, %v1175_v60  ;;  %v3144_v55 = vadd.f32 %v1111_v4, %v3658_v58  ;;  %v3150_v2 = vadd.f32 %v1130_v62, %v3662_v14 }
 0x56c   :  { %v1094_v54 = vpop.f32.mrf.mxu2 }
 0x56d   :  { %v3138_v31 = vadd.f32 %v1094_v54, %v3656_v15  ;;  %2214 = vrot.lane.b32.xlu1 %v2213_v27, %s2363_s9  ;;  %3659 = vst [vmem:[#allocation4_spill] sm:$0xff] %v3144_v55  ;;  %v1163_v21 = vmax.f32 %v3144_v55, 0.0  ;;  %v1164_v30 = vmax.f32 %v3150_v2, 0.0  ;;  %v3676_v27 = vld [vmem:[#allocation15_spill] sm:$0xff] }
 0x56e   :  { %3663 = vst [vmem:[#allocation12_spill] sm:$0xff] %v3150_v2 }
 0x56f   :  { %3657 = vst [vmem:[#allocation2_spill] sm:$0xff] %v3138_v31  ;;  %v1167_v6 = vmax.f32 %v3138_v31, 0.0  ;;  %v2223_v48 = vpack.i.bf16 %v1164_v30, %v1163_v21 }
 0x571   :  { %v2203_v56 = vpack.i.bf16 %v1167_v6, %v1162_v9 }
 0x572   :  { %v1132_v53 = vpop.f32.mrf.mxu0  ;;  %v1113_v11 = vpop.f32.mrf.mxu3 }
 0x573   :  { %v3147_v28 = vadd.f32 %v1132_v53, %v3660_v20  ;;  %2204 = vrot.lane.b32.xlu2 %v2203_v56, %s2363_s9  ;;  %v3154_v49 = vadd.f32 %v1113_v11, %v3664_v63 }
 0x574   :  { %v1097_v19 = vpop.f32.mrf.mxu2 }
 0x575   :  { %3661 = vst [vmem:[#allocation6_spill] sm:$0xff] %v3147_v28  ;;  %v1169_v61 = vmax.f32 %v3147_v28, 0.0  ;;  %v1168_v51 = vmax.f32 %v3154_v49, 0.0  ;;  %v3165_v23 = vadd.f32 %v1097_v19, %v3668_v13 }
 0x576   :  { %3665 = vst [vmem:[#allocation8_spill] sm:$0xff] %v3154_v49 }
 0x577   :  { %v2228_v43 = vpack.i.bf16 %v1169_v61, %v1168_v51  ;;  %3669 = vst [vmem:[#allocation14_spill] sm:$0xff] %v3165_v23  ;;  %v1172_v18 = vmax.f32 %v3165_v23, 0.0 }
 0x579   :  { %2229 = vrot.lane.b32.xlu0 %v2228_v43, %s2363_s9 }
 0x57a   :  { %v1135_v17 = vpop.f32.mrf.mxu0  ;;  %v1116_v44 = vpop.f32.mrf.mxu3 }
 0x57b   :  { %v3161_v29 = vadd.f32 %v1135_v17, %v3666_v22  ;;  %2224 = vrot.lane.b32.xlu2 %v2223_v48, %s2363_s9  ;;  %v3169_v1 = vadd.f32 %v1116_v44, %v3670_v45 }
 0x57c   :  { %v1099_v35 = vpop.f32.mrf.mxu2 }
 0x57d   :  { %3667 = vst [vmem:[#allocation10_spill] sm:$0xff] %v3161_v29  ;;  %v3172_v7 = vadd.f32 %v1099_v35, %v3672_v38  ;;  %v1174_v36 = vmax.f32 %v3161_v29, 0.0  ;;  %v1173_v10 = vmax.f32 %v3169_v1, 0.0 }
 0x57e   :  { %3671 = vst [vmem:[#allocation9_spill] sm:$0xff] %v3169_v1 }
 0x57f   :  { %3673 = vst [vmem:[#allocation13_spill] sm:$0xff] %v3172_v7  ;;  %v1177_v3 = vmax.f32 %v3172_v7, 0.0  ;;  %v2233_v60 = vpack.i.bf16 %v1174_v36, %v1173_v10 }
 0x581   :  { %v2218_v41 = vpack.i.bf16 %v1177_v3, %v1172_v18  ;;  %2234 = vrot.lane.b32.xlu0 %v2233_v60, %s2363_s9 }
 0x582   :  { %v1137_v62 = vpop.f32.mrf.mxu0  ;;  %v1118_v54 = vpop.f32.mrf.mxu3 }
 0x583   :  { %v3180_v4 = vadd.f32 %v1137_v62, %v3674_v5  ;;  %2219 = vrot.lane.b32.xlu1 %v2218_v41, %s2363_s9  ;;  %v3184_v15 = vadd.f32 %v1118_v54, %v3676_v27 }
 0x585   :  { %3675 = vst [vmem:[#allocation11_spill] sm:$0xff] %v3180_v4  ;;  %v1178_v9 = vmax.f32 %v3184_v15, 0.0  ;;  %v1179_v6 = vmax.f32 %v3180_v4, 0.0 }
 0x586   :  { %3677 = vst [vmem:[#allocation16_spill] sm:$0xff] %v3184_v15 }
 0x587   :  { %v2238_v53 = vpack.i.bf16 %v1179_v6, %v1178_v9 }
 0x58b   :  { %2239 = vrot.lane.b32.xlu1 %v2238_v53, %s2363_s9 }
 0x5af   :  { %v2195_v58 = vpop.permute.xlu2 %2194 }
 0x5b0   :  { %v2197_v56 = vunpack.i.h.bf16 %v2195_v58  ;;  %v3189_v20 = vunpack.i.l.bf16 %v2195_v58 }
 0x5b2   :  { %v3193_v14 = vsel %vm54_vm0, %v3189_v20, %v2197_v56  ;;  %v1280_v11 = vsel %vm54_vm0, 0.0, %v3189_v20 }
 0x5b3   :  { %v2248_v63 = vpack.i.bf16 %v3193_v14, %v1280_v11 }
 0x5b5   :  { %2249 = vrot.lane.b32.xlu2 %v2248_v63, %s2364_s0  ;;  %2244 = vrot.lane.b32.xlu0 %v2248_v63, %s2365_s12 }
 0x5cd   :  { %v2205_v19 = vpop.permute.xlu2 %2204 }
 0x5ce   :  { %v2206_v21 = vunpack.i.l.bf16 %v2205_v19  ;;  %v2207_v51 = vunpack.i.h.bf16 %v2205_v19 }
 0x5cf   :  { %v2200_v61 = vpop.permute.xlu0 %2199 }
 0x5d0   :  { %v2202_v30 = vunpack.i.h.bf16 %v2200_v61  ;;  %v3200_v17 = vunpack.i.l.bf16 %v2200_v61  ;;  %v3215_v45 = vsel %vm54_vm0, %v2197_v56, %v2206_v21 }
 0x5d2   :  { %v3206_v48 = vsel %vm54_vm0, %v3200_v17, %v2202_v30  ;;  %v1281_v22 = vsel %vm54_vm0, 0.0, %v3200_v17  ;;  %v3211_v13 = vsel %vm54_vm0, %v2202_v30, %v2207_v51 }
 0x5d3   :  { %v2258_v44 = vpack.i.bf16 %v3206_v48, %v1281_v22  ;;  %v2268_v41 = vpack.i.bf16 %v3211_v13, %v3215_v45 }
 0x5d5   :  { %2259 = vrot.lane.b32.xlu0 %v2258_v44, %s2364_s0  ;;  %2254 = vrot.lane.b32.xlu1 %v2258_v44, %s2365_s12  ;;  %v2225_v9 = vpop.permute.xlu2 %2224 }
 0x5d6   :  { %v2227_v63 = vunpack.i.h.bf16 %v2225_v9  ;;  %v2226_v19 = vunpack.i.l.bf16 %v2225_v9 }
 0x5d7   :  { %v2210_v36 = vpop.permute.xlu0 %2209 }
 0x5d8   :  { %v2212_v10 = vunpack.i.h.bf16 %v2210_v36  ;;  %v3223_v18 = vunpack.i.l.bf16 %v2210_v36  ;;  %v3254_v61 = vsel %vm54_vm0, %v2206_v21, %v2226_v19  ;;  %v3257_v30 = vsel %vm54_vm0, %v2226_v19, %v2227_v63 }
 0x5d9   :  { %v2303_v44 = vpack.i.bf16 %v3257_v30, %v3254_v61 }
 0x5da   :  { %v3227_v3 = vsel %vm54_vm0, %v3223_v18, %v2212_v10  ;;  %v1282_v62 = vsel %vm54_vm0, 0.0, %v3223_v18 }
 0x5db   :  { %v2278_v60 = vpack.i.bf16 %v3227_v3, %v1282_v62 }
 0x5dd   :  { %2279 = vrot.lane.b32.xlu2 %v2278_v60, %s2364_s0  ;;  %2269 = vrot.lane.b32.xlu0 %v2268_v41, %s2364_s0 }
 0x5de   :  { %2264 = vrot.lane.b32.xlu1 %v2268_v41, %s2365_s12 }
 0x5df   :  { %v2215_v5 = vpop.permute.xlu1 %2214 }
 0x5e0   :  { %v2217_v54 = vunpack.i.h.bf16 %v2215_v5  ;;  %v3237_v27 = vunpack.i.l.bf16 %v2215_v5 }
 0x5e2   :  { %v3243_v53 = vsel %vm54_vm0, %v3237_v27, %v2217_v54  ;;  %v1283_v58 = vsel %vm54_vm0, 0.0, %v3237_v27 }
 0x5e3   :  { %v2283_v56 = vpack.i.bf16 %v3243_v53, %v1283_v58 }
 0x5e5   :  { %2284 = vrot.lane.b32.xlu2 %v2283_v56, %s2365_s12  ;;  %2289 = vrot.lane.b32.xlu0 %v2283_v56, %s2364_s0 }
 0x5e6   :  { %2274 = vrot.lane.b32.xlu1 %v2278_v60, %s2365_s12 }
 0x5eb   :  { %v2230_v22 = vpop.permute.xlu0 %2229 }
 0x5ec   :  { %v2232_v36 = vunpack.i.h.bf16 %v2230_v22  ;;  %v2231_v62 = vunpack.i.l.bf16 %v2230_v22 }
 0x5ed   :  { %2304 = vrot.lane.b32.xlu0 %v2303_v44, %s2365_s12 }
 0x5ee   :  { %v3263_v41 = vsel %vm54_vm0, %v2231_v62, %v2232_v36  ;;  %v3266_v5 = vsel %vm54_vm0, %v2207_v51, %v2231_v62 }
 0x5f3   :  { %v2235_v38 = vpop.permute.xlu0 %2234 }
 0x5f4   :  { %v2237_v60 = vunpack.i.h.bf16 %v2235_v38  ;;  %v2236_v21 = vunpack.i.l.bf16 %v2235_v38 }
 0x5f5   :  { %v2220_v9 = vpop.permute.xlu1 %2219 }
 0x5f6   :  { %v2222_v58 = vunpack.i.h.bf16 %v2220_v9  ;;  %v2221_v56 = vunpack.i.l.bf16 %v2220_v9  ;;  %v1285_v9 = vsel %vm54_vm0, %v2232_v36, 0.0  ;;  %v1286_v43 = vsel %vm54_vm0, %v2237_v60, 0.0 }
 0x5f7   :  { %v2313_v6 = vpack.i.bf16 %v1285_v9, %v3263_v41 }
 0x5f8   :  { %v3273_v19 = vsel %vm54_vm0, %v2212_v10, %v2221_v56  ;;  %v3276_v22 = vsel %vm54_vm0, %v2217_v54, %v2222_v58  ;;  %v1284_v54 = vsel %vm54_vm0, %v2227_v63, 0.0  ;;  %v3297_v38 = vsel %vm54_vm0, %v2221_v56, %v2236_v21 }
 0x5f9   :  { %v2298_v51 = vpack.i.bf16 %v3276_v22, %v3273_v19 }
 0x5fb   :  { %2299 = vrot.lane.b32.xlu2 %v2298_v51, %s2364_s0  ;;  %2294 = vrot.lane.b32.xlu1 %v2298_v51, %s2365_s12  ;;  %v2308_v51 = vpack.i.bf16 %v3266_v5, %v1284_v54 }
 0x5fd   :  { %v2240_v10 = vpop.permute.xlu1 %2239 }
 0x5fe   :  { %v2242_v35 = vunpack.i.h.bf16 %v2240_v10  ;;  %v2241_v11 = vunpack.i.l.bf16 %v2240_v10  ;;  %v3300_v10 = vsel %vm54_vm0, %v2236_v21, %v2237_v60 }
 0x600   :  { %v3289_v4 = vsel %vm54_vm0, %v2222_v58, %v2241_v11  ;;  %v3292_v62 = vsel %vm54_vm0, %v2241_v11, %v2242_v35  ;;  %v2318_v11 = vpack.i.bf16 %v3300_v10, %v3297_v38 }
 0x601   :  { %v2323_v36 = vpack.i.bf16 %v3289_v4, %v1286_v43  ;;  %v1287_v43 = vsel %vm54_vm0, %v2242_v35, 0.0 }
 0x602   :  { %v2328_v21 = vpack.i.bf16 %v1287_v43, %v3292_v62 }
 0x603   :  { %2314 = vrot.lane.b32.xlu2 %v2313_v6, %s2365_s12  ;;  %2309 = vrot.lane.b32.xlu1 %v2308_v51, %s2365_s12 }
 0x604   :  { %2324 = vrot.lane.b32.xlu0 %v2323_v36, %s2365_s12 }
 0x60b   :  { %2319 = vrot.lane.b32.xlu2 %v2318_v11, %s2365_s12  ;;  %2329 = vrot.lane.b32.xlu1 %v2328_v21, %s2365_s12 }
 0x60c   :  { %2344 = vrot.lane.b32.xlu0 %v2328_v21, %s2364_s0 }
 0x60f   :  { %v3321_v60 = vpop.permute.xlu2 %2249 }
 0x613   :  { %2334 = vrot.lane.b32.xlu1 %v2318_v11, %s2364_s0  ;;  %2339 = vrot.lane.b32.xlu2 %v2323_v36, %s2364_s0 }
 0x614   :  { %2359 = vrot.lane.b32.xlu0 %v2313_v6, %s2364_s0 }
 0x61b   :  { %2349 = vrot.lane.b32.xlu1 %v2303_v44, %s2364_s0  ;;  %2354 = vrot.lane.b32.xlu2 %v2308_v51, %s2364_s0 }
 0x627   :  { %v2245_v35 = vpop.permute.xlu0 %2244 }
 0x628   :  { %v2247_v29 = vunpack.i.h.bf16 %v2245_v35  ;;  %v2246_v23 = vunpack.i.l.bf16 %v2245_v35 }
 0x637   :  { %v3325_v54 = vpop.permute.xlu2 %2279 }
 0x638   :  { %v2281_v2 = vunpack.i.l.bf16 %v3325_v54 }
 0x63f   :  { %v2285_v11 = vpop.permute.xlu2 %2284 }
 0x640   :  { %v2287_v36 = vunpack.i.h.bf16 %v2285_v11  ;;  %v2286_v58 = vunpack.i.l.bf16 %v2285_v11  ;;  %v2282_v11 = vunpack.i.h.bf16 %v3325_v54 }
 0x642   :  { %v1447_v57 = vsel %vm104_vm2, %v2286_v58, %v2287_v36 }
 0x647   :  { %v3323_v56 = vpop.permute.xlu0 %2259  ;;  %v2255_v9 = vpop.permute.xlu1 %2254 }
 0x648   :  { %v2257_v63 = vunpack.i.h.bf16 %v2255_v9  ;;  %v2256_v44 = vunpack.i.l.bf16 %v2255_v9  ;;  %v2262_v35 = vunpack.i.h.bf16 %v3323_v56 }
 0x64a   :  { %v1437_v12 = vsel %vm104_vm2, %v2256_v44, %v2257_v63 }
 0x64f   :  { %v3327_v43 = vpop.permute.xlu0 %2269 }
 0x650   :  { %v3329_v21 = vpop.permute.xlu1 %2264 }
 0x655   :  { %v3336_v9 = vpop.permute.xlu2 %2299 }
 0x657   :  { %v2290_v15 = vpop.permute.xlu0 %2289 }
 0x658   :  { %v2275_v6 = vpop.permute.xlu1 %2274  ;;  %v2292_v31 = vunpack.i.h.bf16 %v2290_v15  ;;  %v2291_v49 = vunpack.i.l.bf16 %v2290_v15  ;;  %v1354_v15 = vsel %vm81_vm4, %v2281_v2, %v2282_v11  ;;  %v3678_v2 = vpack.c.bf16 %v3237_v27, %v3223_v18 }
 0x659   :  { %v2277_v7 = vunpack.i.h.bf16 %v2275_v6  ;;  %v2276_v51 = vunpack.i.l.bf16 %v2275_v6  ;;  %v1432_v6 = vsel %vm104_vm2, %v2246_v23, %v2247_v29  ;;  %v3679_v18 = vpack.c.bf16 %v3200_v17, %v3189_v20 }
 0x65a   :  { %v1494_v24 = vpack.c.bf16 %v1437_v12, %v1432_v6  ;;  %v3610_v27 = vunpack.i.l.bf16 %v3336_v9 }
 0x65b   :  { %v1442_v1 = vsel %vm104_vm2, %v2276_v51, %v2277_v7  ;;  %v2261_v51 = vunpack.i.l.bf16 %v3323_v56 }
 0x65c   :  { %v1499_v28 = vpack.c.bf16 %v1447_v57, %v1442_v1  ;;  %v1359_v57 = vsel %vm81_vm4, %v2291_v49, %v2292_v31  ;;  %v2252_v1 = vunpack.i.h.bf16 %v3321_v60  ;;  %v2267_v49 = vunpack.i.h.bf16 %v3329_v21 }
 0x65d   :  { %v1489_v58 = vpack.c.bf16 %v1359_v57, %v1354_v15  ;;  %v1349_v54 = vsel %vm81_vm4, %v2261_v51, %v2262_v35  ;;  %v3347_v44 = vpop.permute.xlu2 %2314  ;;  %v3363_v15 = vld [vmem:[%s3577_s6] sm:$0xff] }
 0x65e   :  { %1514 = vmatpush.bf16.msra.mxu1 %v1499_v28  ;;  %v2251_v28 = vunpack.i.l.bf16 %v3321_v60 }
 0x65f   :  { %v3351_v6 = vpop.permute.xlu0 %2304 }
 0x660   :  { %v1344_v23 = vsel %vm81_vm4, %v2251_v28, %v2252_v1 }
 0x661   :  { %v1484_v12 = vpack.c.bf16 %v1349_v54, %v1344_v23 }
 0x662   :  { %1515 = vmatpush.bf16.msra.mxu1 %v1494_v24  ;;  %v2266_v24 = vunpack.i.l.bf16 %v3329_v21 }
 0x664   :  { %v1433_v21 = vsel %vm104_vm2, %v2247_v29, %v2266_v24  ;;  %v2272_v29 = vunpack.i.h.bf16 %v3327_v43 }
 0x666   :  { %1516 = vmatpush.bf16.msra.mxu1 %v1489_v58  ;;  %v1438_v58 = vsel %vm104_vm2, %v2257_v63, %v2267_v49  ;;  %v3613_v63 = vunpack.i.l.bf16 %v3327_v43 }
 0x667   :  { %v1495_v23 = vpack.c.bf16 %v1438_v58, %v1433_v21 }
 0x66a   :  { %1517 = vmatpush.bf16.msra.mxu1 %v1484_v12 }
 0x66d   :  { %v2295_v56 = vpop.permute.xlu1 %2294 }
 0x66e   :  { %v2297_v60 = vunpack.i.h.bf16 %v2295_v56  ;;  %v2296_v55 = vunpack.i.l.bf16 %v2295_v56  ;;  %1867 = vmatpush.bf16.msk.msra.mxu1 %vm2622_vm10, %v3678_v2  ;;  %v1355_v2 = vsel %vm81_vm4, %v2282_v11, %v3610_v27 }
 0x670   :  { %v1443_v51 = vsel %vm104_vm2, %v2277_v7, %v2296_v55  ;;  %v1448_v57 = vsel %vm104_vm2, %v2287_v36, %v2297_v60  ;;  %v3611_v7 = vunpack.i.h.bf16 %v3336_v9  ;;  %v2320_v36 = vpop.permute.xlu2 %2319 }
 0x671   :  { %v1500_v28 = vpack.c.bf16 %v1448_v57, %v1443_v51  ;;  %v2321_v17 = vunpack.i.l.bf16 %v2320_v36  ;;  %v2306_v51 = vunpack.i.l.bf16 %v3351_v6  ;;  %v2322_v11 = vunpack.i.h.bf16 %v2320_v36 }
 0x672   :  { %1872 = vmatpush.bf16.msk.msra.mxu1 %vm2622_vm10, %v3679_v18  ;;  %v1360_v39 = vsel %vm81_vm4, %v2292_v31, %v3611_v7  ;;  %v1345_v31 = vsel %vm81_vm4, %v2252_v1, %v3613_v63  ;;  %v1350_v18 = vsel %vm81_vm4, %v2262_v35, %v2272_v29  ;;  %v2316_v1 = vunpack.i.l.bf16 %v3347_v44 }
 0x673   :  { %1528 = vmatpush.bf16.msrb.mxu2 %v1500_v28  ;;  %v1490_v57 = vpack.c.bf16 %v1360_v39, %v1355_v2  ;;  %v1444_v28 = vsel %vm104_vm2, %v2296_v55, %v2321_v17  ;;  %v1485_v2 = vpack.c.bf16 %v1350_v18, %v1345_v31  ;;  %v1434_v55 = vsel %vm104_vm2, %v2266_v24, %v2306_v51 }
 0x674   :  { %v2307_v63 = vunpack.i.h.bf16 %v3351_v6 }
 0x675   :  { %v2310_v54 = vpop.permute.xlu1 %2309  ;;  %1873 = vmatmul.msk.bf16.vlgmr.msra.gmra.mxu1 %vm925_vm12, %v3363_v15 }
 0x676   :  { %1555 = vmatpush.bf16.msrb.mxu1 %v2600_v37  ;;  %v2325_v20 = vpop.permute.xlu0 %2324  ;;  %v2312_v12 = vunpack.i.h.bf16 %v2310_v54  ;;  %v2311_v35 = vunpack.i.l.bf16 %v2310_v54 }
 0x677   :  { %v2327_v56 = vunpack.i.h.bf16 %v2325_v20  ;;  %1529 = vmatpush.bf16.msrb.mxu2 %v1495_v23  ;;  %v2326_v27 = vunpack.i.l.bf16 %v2325_v20 }
 0x678   :  { %v1439_v23 = vsel %vm104_vm2, %v2267_v49, %v2312_v12  ;;  %v1445_v49 = vsel %vm104_vm2, %v2321_v17, %v2322_v11  ;;  %v1440_v18 = vsel %vm104_vm2, %v2312_v12, %v2316_v1  ;;  %v1436_v54 = vsel %vm104_vm2, %v2307_v63, %v2311_v35 }
 0x679   :  { %v1449_v21 = vsel %vm104_vm2, %v2297_v60, %v2327_v56  ;;  %v2340_v60 = vpop.permute.xlu2 %2339  ;;  %v1496_v8 = vpack.c.bf16 %v1439_v23, %v1434_v55  ;;  %v1446_v20 = vsel %vm104_vm2, %v2322_v11, %v2326_v27  ;;  %v1435_v27 = vsel %vm104_vm2, %v2306_v51, %v2307_v63 }
 0x67a   :  { %v1501_v58 = vpack.c.bf16 %v1449_v21, %v1444_v28  ;;  %v2342_v23 = vunpack.i.h.bf16 %v2340_v60  ;;  %v2341_v11 = vunpack.i.l.bf16 %v2340_v60  ;;  %v3683_v60 = vunpack.i.l.bf16 %v3336_v9 }
 0x67b   :  { %1530 = vmatpush.bf16.msrb.mxu2 %v1490_v57  ;;  %v2317_v57 = vunpack.i.h.bf16 %v3347_v44 }
 0x67c   :  { %1542 = vmatpush.bf16.msrb.mxu3 %v1501_v58 }
 0x67d   :  { %v2330_v39 = vpop.permute.xlu1 %2329  ;;  %v1441_v44 = vsel %vm104_vm2, %v2316_v1, %v2317_v57 }
 0x67e   :  { %v2332_v28 = vunpack.i.h.bf16 %v2330_v39  ;;  %v2331_v21 = vunpack.i.l.bf16 %v2330_v39  ;;  %v2345_v7 = vpop.permute.xlu0 %2344  ;;  %v1498_v55 = vpack.c.bf16 %v1441_v44, %v1436_v54 }
 0x67f   :  { %1531 = vmatpush.bf16.msrb.mxu2 %v1485_v2  ;;  %v2347_v39 = vunpack.i.h.bf16 %v2345_v7  ;;  %v2346_v6 = vunpack.i.l.bf16 %v2345_v7  ;;  %v3681_v7 = vpack.c.bf16 %v3206_v48, %v3193_v14 }
 0x680   :  { %1543 = vmatpush.bf16.msrb.mxu3 %v1496_v8  ;;  %v1450_v36 = vsel %vm104_vm2, %v2327_v56, %v2331_v21  ;;  %v1451_v24 = vsel %vm104_vm2, %v2331_v21, %v2332_v28  ;;  %v3680_v8 = vpack.c.bf16 %v3243_v53, %v3227_v3  ;;  %v1497_v56 = vpack.c.bf16 %v1440_v18, %v1435_v27 }
 0x681   :  { %v1502_v58 = vpack.c.bf16 %v1450_v36, %v1445_v49  ;;  %v1503_v31 = vpack.c.bf16 %v1451_v24, %v1446_v20  ;;  %v3682_v3 = vunpack.i.h.bf16 %v3336_v9  ;;  %v1362_v28 = vsel %vm81_vm4, %v2342_v23, %v2346_v6  ;;  %v2355_v51 = vpop.permute.xlu2 %2354 }
 0x682   :  { %v1363_v63 = vsel %vm81_vm4, %v2346_v6, %v2347_v39  ;;  %v2357_v20 = vunpack.i.h.bf16 %v2355_v51  ;;  %v3684_v6 = vunpack.i.l.bf16 %v3327_v43  ;;  %v3686_v43 = vpack.c.bf16 %v3289_v4, %v3297_v38 }
 0x683   :  { %1532 = vmatpush.bf16.msrb.mxu2 %v3680_v8  ;;  %1556 = vmatpush.bf16.msrb.mxu1 %v1502_v58  ;;  %v1361_v53 = vsel %vm81_vm4, %v3682_v3, %v2342_v23  ;;  %v2356_v58 = vunpack.i.l.bf16 %v2355_v51 }
 0x684   :  { %1570 = vmatpush.bf16.msra.mxu0 %v1503_v31  ;;  %v1351_v23 = vsel %vm81_vm4, %v2272_v29, %v2357_v20  ;;  %v3685_v29 = vpack.c.bf16 %v3276_v22, %v3273_v19  ;;  %v3690_v19 = vpack.c.bf16 %v3263_v41, %v3257_v30  ;;  %v1904_v41 = vld [vmem:[%s3578_s7 + $0x8] sm:$0xff] }
 0x685   :  { %v2335_v17 = vpop.permute.xlu1 %2334 }
 0x686   :  { %v2337_v2 = vunpack.i.h.bf16 %v2335_v17  ;;  %v2336_v12 = vunpack.i.l.bf16 %v2335_v17  ;;  %v2360_v21 = vpop.permute.xlu0 %2359 }
 0x687   :  { %1533 = vmatpush.bf16.msrb.mxu2 %v3681_v7  ;;  %1557 = vmatpush.bf16.msrb.mxu1 %v1497_v56  ;;  %v2361_v24 = vunpack.i.l.bf16 %v2360_v21  ;;  %v2362_v57 = vunpack.i.h.bf16 %v2360_v21 }
 0x688   :  { %1571 = vmatpush.bf16.msra.mxu0 %v1498_v55  ;;  %v1356_v1 = vsel %vm81_vm4, %v3683_v60, %v2336_v12  ;;  %v1357_v35 = vsel %vm81_vm4, %v2336_v12, %v2337_v2  ;;  %v1358_v14 = vsel %vm81_vm4, %v2337_v2, %v2341_v11  ;;  %v3687_v2 = vpack.c.bf16 %v3292_v62, %v3300_v10 }
 0x689   :  { %v1491_v48 = vpack.c.bf16 %v1361_v53, %v1356_v1  ;;  %v1492_v49 = vpack.c.bf16 %v1362_v28, %v1357_v35  ;;  %v1493_v36 = vpack.c.bf16 %v1363_v63, %v1358_v14  ;;  %v1352_v39 = vsel %vm81_vm4, %v2357_v20, %v2361_v24 }
 0x68a   :  { %1874 = vmatmul.msk.bf16.vlgmr.msrb.gmra.mxu2 %vm925_vm12, %v3363_v15  ;;  %v1353_v17 = vsel %vm81_vm4, %v2361_v24, %v2362_v57  ;;  %v3688_v12 = vpack.c.bf16 %v3211_v13, %v3215_v45  ;;  %v3689_v55 = vpack.c.bf16 %v3266_v5, %v3254_v61 }
 0x68b   :  { %1633 = vmatpush.bf16.msra.mxu2 %v2589_v32  ;;  %1544 = vmatpush.bf16.msrb.mxu3 %v1491_v48 }
 0x68c   :  { %1558 = vmatpush.bf16.msrb.mxu1 %v1492_v49  ;;  %1572 = vmatpush.bf16.msra.mxu0 %v1493_v36 }
 0x68d   :  { %v2350_v9 = vpop.permute.xlu1 %2349 }
 0x68e   :  { %v2352_v31 = vunpack.i.h.bf16 %v2350_v9  ;;  %v2351_v18 = vunpack.i.l.bf16 %v2350_v9 }
 0x690   :  { %v1346_v8 = vsel %vm81_vm4, %v3684_v6, %v2351_v18  ;;  %v1347_v54 = vsel %vm81_vm4, %v2351_v18, %v2352_v31  ;;  %v1348_v27 = vsel %vm81_vm4, %v2352_v31, %v2356_v58 }
 0x691   :  { %v1486_v56 = vpack.c.bf16 %v1351_v23, %v1346_v8  ;;  %v1487_v44 = vpack.c.bf16 %v1352_v39, %v1347_v54  ;;  %v1488_v11 = vpack.c.bf16 %v1353_v17, %v1348_v27 }
 0x693   :  { %1545 = vmatpush.bf16.msrb.mxu3 %v1486_v56  ;;  %1559 = vmatpush.bf16.msrb.mxu1 %v1487_v44  ;;  %v3691_v56 = vld [vmem:[#allocation17_spill] sm:$0xff] }
 0x694   :  { %1573 = vmatpush.bf16.msra.mxu0 %v1488_v11  ;;  %v3692_v11 = vld [vmem:[#allocation4_spill] sm:$0xff] }
 0x697   :  { %1546 = vmatpush.bf16.msrb.mxu3 %v3685_v29  ;;  %1560 = vmatpush.bf16.msrb.mxu1 %v3686_v43 }
 0x698   :  { %1574 = vmatpush.bf16.msra.mxu0 %v3687_v2 }
 0x69b   :  { %1547 = vmatpush.bf16.msrb.mxu3 %v3688_v12  ;;  %1561 = vmatpush.bf16.msrb.mxu1 %v3689_v55  ;;  %v3693_v12 = vld [vmem:[#allocation7_spill] sm:$0xff] }
 0x69c   :  { %1575 = vmatpush.bf16.msra.mxu0 %v3690_v19 }
 0x69e   :  { %1875 = vmatmul.msk.bf16.vlgmr.msrb.gmra.mxu3 %vm925_vm12, %v3363_v15  ;;  %1876 = vmatmul.msk.bf16.vlgmr.msrb.gmra.mxu1 %vm925_vm12, %v3363_v15 }
 0x69f   :  { %1905 = vmatpush.bf16.msra.mxu3 %v2589_v32  ;;  %1671 = vmatpush.bf16.msra.mxu1 %v2593_v34  ;;  %v1903_v34 = vld [vmem:[%s3578_s7] sm:$0xff] }
 0x6a0   :  { %1690 = vmatpush.bf16.msrb.mxu0 %v2600_v37 }
 0x6a1   :  { %1877 = vmatmul.msk.bf16.vlgmr.msra.gmra.mxu0 %vm925_vm12, %v3363_v15 }
 0x6f2   :  { %v1521_v4 = vpop.f32.mrf.mxu1 }
 0x6f3   :  { %v1582_v13 = vmul.f32 %v1521_v4, %v2471_v46  ;;  %v3694_v4 = vld [vmem:[#allocation12_spill] sm:$0xff] }
 0x6f5   :  { %v1592_v61 = vmax.f32 %v1582_v13, 0.0 }
 0x6fa   :  { %v1523_v45 = vpop.f32.mrf.mxu1 }
 0x6fb   :  { %v1587_v32 = vmul.f32 %v1523_v45, %v2471_v46 }
 0x6fd   :  { %v1597_v30 = vmax.f32 %v1587_v32, 0.0 }
 0x6ff   :  { %v1606_v37 = vpack.c.bf16 %v1597_v30, %v1592_v61  ;;  %v3695_v30 = vld [vmem:[#allocation3_spill] sm:$0xff] }
 0x701   :  { %1634 = vmatpush.bf16.msra.mxu2 %v1606_v37  ;;  %1906 = vmatpush.bf16.msra.mxu3 %v1606_v37 }
 0x704   :  { %1886 = vmatmul.msk.bf16.vlgmr.msra.gmra.mxu2 %vm1038_vm13, %v1903_v34  ;;  %1887 = vmatmul.msk.bf16.vlgmr.msra.gmra.mxu3 %vm1038_vm13, %v1904_v41 }
 0x705   :  { %1652 = vmatpush.bf16.msrb.mxu3 %v2591_v33  ;;  %1709 = vmatpush.bf16.msrb.mxu2 %v2626_v42 }
 0x70d   :  { %v1535_v46 = vpop.f32.mrf.mxu2 }
 0x70e   :  { %v1583_v5 = vmul.f32 %v1535_v46, %v2473_v47 }
 0x710   :  { %v1593_v62 = vmax.f32 %v1583_v5, 0.0 }
 0x715   :  { %v1537_v22 = vpop.f32.mrf.mxu2 }
 0x716   :  { %v1588_v38 = vmul.f32 %v1537_v22, %v2473_v47 }
 0x718   :  { %v1598_v10 = vmax.f32 %v1588_v38, 0.0  ;;  %v3697_v38 = vld [vmem:[#allocation2_spill] sm:$0xff] }
 0x71a   :  { %v1607_v15 = vpack.c.bf16 %v1598_v10, %v1593_v62 }
 0x71b   :  { %v1563_v7 = vpop.f32.mrf.mxu1 }
 0x71c   :  { %1653 = vmatpush.bf16.msrb.mxu3 %v1607_v15  ;;  %v1585_v42 = vmul.f32 %v1563_v7, %v2466_v40  ;;  %v3698_v7 = vld [vmem:[#allocation6_spill] sm:$0xff] }
 0x71e   :  { %v1577_v3 = vpop.f32.mrf.mxu0  ;;  %v1595_v60 = vmax.f32 %v1585_v42, 0.0 }
 0x71f   :  { %1888 = vmatmul.msk.bf16.vlgmr.msrb.gmra.mxu3 %vm1038_vm13, %v1903_v34  ;;  %v1586_v53 = vmul.f32 %v1577_v3, %v2479_v59 }
 0x721   :  { %v1549_v33 = vpop.f32.mrf.mxu3  ;;  %v1596_v1 = vmax.f32 %v1586_v53, 0.0 }
 0x722   :  { %v1584_v14 = vmul.f32 %v1549_v33, %v2458_v25 }
 0x723   :  { %v1565_v28 = vpop.f32.mrf.mxu1 }
 0x724   :  { %v1590_v63 = vmul.f32 %v1565_v28, %v2466_v40  ;;  %v1594_v24 = vmax.f32 %v1584_v14, 0.0  ;;  %v3699_v28 = vld [vmem:[#allocation5_spill] sm:$0xff]  ;;  %v3701_v14 = vld [vmem:[#allocation14_spill] sm:$0xff] }
 0x726   :  { %v1579_v51 = vpop.f32.mrf.mxu0  ;;  %v1600_v47 = vmax.f32 %v1590_v63, 0.0 }
 0x727   :  { %v1591_v21 = vmul.f32 %v1579_v51, %v2479_v59  ;;  %v3700_v51 = vld [vmem:[#allocation9_spill] sm:$0xff] }
 0x728   :  { %v1609_v48 = vpack.c.bf16 %v1600_v47, %v1595_v60 }
 0x729   :  { %v1601_v35 = vmax.f32 %v1591_v21, 0.0  ;;  %v1551_v36 = vpop.f32.mrf.mxu3 }
 0x72a   :  { %v1589_v20 = vmul.f32 %v1551_v36, %v2458_v25  ;;  %1691 = vmatpush.bf16.msrb.mxu0 %v1609_v48  ;;  %v3702_v36 = vld [vmem:[#allocation10_spill] sm:$0xff] }
 0x72b   :  { %v1610_v49 = vpack.c.bf16 %v1601_v35, %v1596_v1 }
 0x72c   :  { %v1599_v57 = vmax.f32 %v1589_v20, 0.0 }
 0x72d   :  { %1710 = vmatpush.bf16.msrb.mxu2 %v1610_v49  ;;  %1892 = vmatmul.msk.bf16.vlgmr.msrb.gmra.mxu0 %vm1038_vm13, %v1903_v34 }
 0x72e   :  { %v1608_v40 = vpack.c.bf16 %v1599_v57, %v1594_v24 }
 0x72f   :  { %1889 = vmatmul.msk.bf16.gmra.mxu3 %vm1038_vm13, %v1904_v41 }
 0x730   :  { %1894 = vmatmul.msk.bf16.vlgmr.msrb.gmra.mxu2 %vm1038_vm13, %v1903_v34  ;;  %1672 = vmatpush.bf16.msra.mxu1 %v1608_v40  ;;  %v3703_v40 = vld [vmem:[#allocation16_spill] sm:$0xff] }
 0x733   :  { %1890 = vmatmul.msk.bf16.vlgmr.msra.gmra.mxu1 %vm1038_vm13, %v1903_v34  ;;  %v3696_v34 = vld [vmem:[#allocation8_spill] sm:$0xff] }
 0x73d   :  { %1893 = vmatmul.msk.bf16.gmra.mxu0 %vm1038_vm13, %v1904_v41 }
 0x740   :  { %1895 = vmatmul.msk.bf16.gmra.mxu2 %vm1038_vm13, %v1904_v41 }
 0x743   :  { %1891 = vmatmul.msk.bf16.gmra.mxu1 %vm1038_vm13, %v1904_v41 }
 0x787   :  { %v1636_v25 = vpop.f32.mrf.mxu2  ;;  %v1641_v59 = vpop.f32.mrf.mxu3 }
 0x788   :  { %v1722_v9 = vadd.f32 %v1636_v25, %v3100_v0  ;;  %v1732_v58 = vadd.f32 %v1641_v59, %v3117_v26 }
 0x78a   :  { %v1742_v31 = vmax.f32 %v1722_v9, 0.0  ;;  %v1752_v18 = vmax.f32 %v1732_v58, 0.0 }
 0x78c   :  { %1762 = vst [vmem:[%s3579_s8] sm:$0xff] %v1742_v31  ;;  %v3704_v31 = vld [vmem:[#allocation13_spill] sm:$0xff] }
 0x78d   :  { %1772 = vst [vmem:[%s3579_s8 + $0x50] sm:$0xff] %v1752_v18 }
 0x78f   :  { %v1638_v23 = vpop.f32.mrf.mxu2  ;;  %v1643_v39 = vpop.f32.mrf.mxu3 }
 0x790   :  { %v1727_v6 = vadd.f32 %v1638_v23, %v3108_v52  ;;  %v1737_v8 = vadd.f32 %v1643_v39, %v3126_v16  ;;  %v3705_v39 = vld [vmem:[#allocation11_spill] sm:$0xff] }
 0x792   :  { %v1747_v54 = vmax.f32 %v1727_v6, 0.0  ;;  %v1757_v0 = vmax.f32 %v1737_v8, 0.0 }
 0x794   :  { %1767 = vst [vmem:[%s3579_s8 + $0x28] sm:$0xff] %v1747_v54 }
 0x795   :  { %1777 = vst [vmem:[%s3579_s8 + $0x78] sm:$0xff] %v1757_v0 }
 0x7a2   :  { %v1655_v26 = vpop.f32.mrf.mxu3 }
 0x7a3   :  { %v1723_v27 = vadd.f32 %v1655_v26, %v3103_v50 }
 0x7a5   :  { %v1743_v17 = vmax.f32 %v1723_v27, 0.0 }
 0x7a7   :  { %1763 = vst [vmem:[%s3579_s8 + $0x8] sm:$0xff] %v1743_v17 }
 0x7aa   :  { %v1657_v52 = vpop.f32.mrf.mxu3  ;;  %v1693_v16 = vpop.f32.mrf.mxu0 }
 0x7ab   :  { %v1728_v44 = vadd.f32 %v1657_v52, %v3691_v56  ;;  %v1725_v29 = vadd.f32 %v1693_v16, %v3692_v11 }
 0x7ad   :  { %v1748_v43 = vmax.f32 %v1728_v44, 0.0  ;;  %v1745_v2 = vmax.f32 %v1725_v29, 0.0 }
 0x7af   :  { %1768 = vst [vmem:[%s3579_s8 + $0x30] sm:$0xff] %v1748_v43 }
 0x7b0   :  { %1765 = vst [vmem:[%s3579_s8 + $0x18] sm:$0xff] %v1745_v2  ;;  %v1674_v50 = vpop.f32.mrf.mxu1 }
 0x7b1   :  { %v1724_v55 = vadd.f32 %v1674_v50, %v3693_v12 }
 0x7b2   :  { %v1660_v45 = vpop.f32.mrf.mxu3  ;;  %v1695_v61 = vpop.f32.mrf.mxu0 }
 0x7b3   :  { %v1712_v19 = vpop.f32.mrf.mxu2  ;;  %v1744_v32 = vmax.f32 %v1724_v55, 0.0  ;;  %v1733_v37 = vadd.f32 %v1660_v45, %v3695_v30  ;;  %v1730_v41 = vadd.f32 %v1695_v61, %v3696_v34 }
 0x7b4   :  { %v1726_v13 = vadd.f32 %v1712_v19, %v3694_v4 }
 0x7b5   :  { %1764 = vst [vmem:[%s3579_s8 + $0x10] sm:$0xff] %v1744_v32  ;;  %v1753_v5 = vmax.f32 %v1733_v37, 0.0  ;;  %v1750_v22 = vmax.f32 %v1730_v41, 0.0 }
 0x7b6   :  { %v1746_v46 = vmax.f32 %v1726_v13, 0.0 }
 0x7b7   :  { %1773 = vst [vmem:[%s3579_s8 + $0x58] sm:$0xff] %v1753_v5 }
 0x7b8   :  { %1766 = vst [vmem:[%s3579_s8 + $0x20] sm:$0xff] %v1746_v46  ;;  %v1676_v62 = vpop.f32.mrf.mxu1 }
 0x7b9   :  { %1770 = vst [vmem:[%s3579_s8 + $0x40] sm:$0xff] %v1750_v22  ;;  %v1729_v10 = vadd.f32 %v1676_v62, %v3697_v38 }
 0x7ba   :  { %v1662_v33 = vpop.f32.mrf.mxu3  ;;  %v1698_v42 = vpop.f32.mrf.mxu0 }
 0x7bb   :  { %v1714_v15 = vpop.f32.mrf.mxu2  ;;  %v1749_v53 = vmax.f32 %v1729_v10, 0.0  ;;  %v1738_v63 = vadd.f32 %v1662_v33, %v3699_v28  ;;  %v1735_v21 = vadd.f32 %v1698_v42, %v3700_v51 }
 0x7bc   :  { %v1731_v3 = vadd.f32 %v1714_v15, %v3698_v7 }
 0x7bd   :  { %1769 = vst [vmem:[%s3579_s8 + $0x38] sm:$0xff] %v1749_v53  ;;  %v1758_v47 = vmax.f32 %v1738_v63, 0.0  ;;  %v1755_v1 = vmax.f32 %v1735_v21, 0.0 }
 0x7be   :  { %v1751_v60 = vmax.f32 %v1731_v3, 0.0 }
 0x7bf   :  { %1778 = vst [vmem:[%s3579_s8 + $0x80] sm:$0xff] %v1758_v47 }
 0x7c0   :  { %1771 = vst [vmem:[%s3579_s8 + $0x48] sm:$0xff] %v1751_v60  ;;  %v1679_v35 = vpop.f32.mrf.mxu1 }
 0x7c1   :  { %1775 = vst [vmem:[%s3579_s8 + $0x68] sm:$0xff] %v1755_v1  ;;  %v1734_v48 = vadd.f32 %v1679_v35, %v3701_v14 }
 0x7c2   :  { %v1700_v24 = vpop.f32.mrf.mxu0 }
 0x7c3   :  { %v1717_v49 = vpop.f32.mrf.mxu2  ;;  %v1754_v57 = vmax.f32 %v1734_v48, 0.0  ;;  %v1740_v25 = vadd.f32 %v1700_v24, %v3703_v40 }
 0x7c4   :  { %v1736_v20 = vadd.f32 %v1717_v49, %v3702_v36 }
 0x7c5   :  { %1774 = vst [vmem:[%s3579_s8 + $0x60] sm:$0xff] %v1754_v57  ;;  %v1760_v9 = vmax.f32 %v1740_v25, 0.0 }
 0x7c6   :  { %v1756_v59 = vmax.f32 %v1736_v20, 0.0 }
 0x7c7   :  { %1780 = vst [vmem:[%s3579_s8 + $0x90] sm:$0xff] %v1760_v9 }
 0x7c8   :  { %1776 = vst [vmem:[%s3579_s8 + $0x70] sm:$0xff] %v1756_v59  ;;  %v1681_v58 = vpop.f32.mrf.mxu1 }
 0x7c9   :  { %v1739_v18 = vadd.f32 %v1681_v58, %v3704_v31 }
 0x7cb   :  { %v1719_v23 = vpop.f32.mrf.mxu2  ;;  %v1759_v8 = vmax.f32 %v1739_v18, 0.0 }
 0x7cc   :  { %v1741_v6 = vadd.f32 %v1719_v23, %v3705_v39 }
 0x7cd   :  { %1779 = vst [vmem:[%s3579_s8 + $0x88] sm:$0xff] %v1759_v8 }
 0x7ce   :  { %v1761_v54 = vmax.f32 %v1741_v6, 0.0 }
 0x7d0   :  { %1781 = vst [vmem:[%s3579_s8 + $0x98] sm:$0xff] %v1761_v54 }

</bundles_post_ra>
